<compile_context>
chip_gen: v5e
topology: v5e:2x2
jax: 0.10.0
libtpu: 0.0.40
codegen_flags: <defaults>
</compile_context>

<pallas_src>
import jax
import jax.numpy as jnp
from jax.experimental import pallas as pl
from jax.experimental.pallas import tpu as pltpu

EPS = 1e-5


# ----------------------------------------------------------------------------
# Fused per-point kernel.  Blocks:
#   xyz_ref : (1, TN, 8)   bf16  points (xyz zero-padded 3->8)
#   ccon_ref: (1, 1, 128)  f32   per-batch term: cls@W1c + b1 + b_sp@W1h
#   w_emb   : (8, 32)      bf16  emb weight (BN folded, K padded)
#   b_emb   : (1, 32)      f32
#   w_f     : (32, 128)    bf16  fused stage-proj ∘ fc1-hidden weight
#   w2t     : (SEG, 128)   bf16  fc2 weight, transposed
#   b2      : (SEG, 1)     f32
#   out_ref : (1, SEG, TN) f32   lane-dense transposed logits
# ----------------------------------------------------------------------------
def _fused_seg_kernel(xyz_ref, ccon_ref,
                      w_emb_ref, b_emb_ref,
                      w_f_ref,
                      w2t_ref, b2_ref,
                      out_ref):
    x = xyz_ref[0]                                               # (TN, 8) bf16

    # emb (Linear 3->32, K padded to 8) + eval-BN (folded) + ReLU
    h = jnp.dot(x, w_emb_ref[...], preferred_element_type=jnp.float32)
    h = jnp.maximum(h + b_emb_ref[...], 0.0)                     # (TN, 32) f32

    # TODO(synk): BiDeformableblock / BiBlock_fp stages are not defined in the
    # provided source; a per-point projection restores fp_out_dim[-1]=128 and
    # is folded (no intermediate nonlinearity) into fc1's hidden-path weight.
    # fc1: concat(h128, cls) @ W1 + b1  ==  h32 @ (Wsp@W1h) + (cls@W1c + b1 + bsp@W1h)
    y = jnp.dot(h.astype(jnp.bfloat16), w_f_ref[...],
                preferred_element_type=jnp.float32)
    y = jnp.maximum(y + ccon_ref[0], 0.0)                        # (TN, 128) f32
    # Dropout(0.5) is identity in eval mode.

    # fc2, produced transposed: (SEG, TN) = W2^T @ y^T  (rhs-transposed MXU dot)
    logits_t = jax.lax.dot_general(
        w2t_ref[...], y.astype(jnp.bfloat16),
        dimension_numbers=(((1,), (1,)), ((), ())),
        preferred_element_type=jnp.float32)                      # (SEG, TN)
    out_ref[0] = (logits_t + b2_ref[...]).astype(out_ref.dtype)


# ----------------------------------------------------------------------------
# Parameters (deterministic, PyTorch-default-style init) and BN folding.
# ----------------------------------------------------------------------------
def init_params(key, seg_num_all=16):
    ks = jax.random.split(key, 8)

    def lin(k, cin, cout):
        kw, kb = jax.random.split(k)
        bound = 1.0 / jnp.sqrt(float(cin))
        w = jax.random.uniform(kw, (cin, cout), jnp.float32, -bound, bound)
        b = jax.random.uniform(kb, (cout,), jnp.float32, -bound, bound)
        return w, b

    def bn(c):  # eval-mode BatchNorm defaults: gamma=1, beta=0, mean=0, var=1
        return (jnp.ones((c,), jnp.float32), jnp.zeros((c,), jnp.float32),
                jnp.zeros((c,), jnp.float32), jnp.ones((c,), jnp.float32))

    return {
        "emb": lin(ks[0], 3, 32),       "emb_bn": bn(32),   # self.emb + self.init_norm
        "stage_proj": lin(ks[1], 32, 128),                  # placeholder stage (see TODO)
        "cls1": lin(ks[2], 16, 64),     "cls_bn": bn(64),   # self.cls_linear
        "fc1": lin(ks[3], 192, 128),    "fc_bn": bn(128),   # self.fc[0:3]
        "fc2": lin(ks[4], 128, seg_num_all),                # self.fc[5]
    }


def _fold_bn(w, b, bn):
    gamma, beta, mean, var = bn
    s = gamma * jax.lax.rsqrt(var + EPS)
    return w * s[None, :], b * s + (beta - mean * s)


def prepare_operands(params):
    seg = params["fc2"][0].shape[1]
    w_emb, b_emb = _fold_bn(*params["emb"], params["emb_bn"])       # (3,32), (32,)
    w_emb = jnp.pad(w_emb, ((0, 5), (0, 0)))                        # K: 3 -> 8
    w_sp, b_sp = params["stage_proj"]                               # (32,128), (128,)
    wc, bc = _fold_bn(*params["cls1"], params["cls_bn"])            # (16,64), (64,)
    w1, b1 = _fold_bn(*params["fc1"], params["fc_bn"])              # (192,128), (128,)
    w2, b2 = params["fc2"]                                          # (128,seg), (seg,)

    w1h, w1c = w1[:128], w1[128:]                                   # (128,128), (64,128)
    # Fold stage-proj into fc1 hidden path (no nonlinearity between them).
    w_fused = w_sp @ w1h                                            # (32,128) f32
    b_fused = b_sp @ w1h + b1                                       # (128,)   f32

    return dict(
        w_emb=w_emb.astype(jnp.bfloat16),
        b_emb=b_emb.reshape(1, 32).astype(jnp.float32),
        wc=wc.astype(jnp.float32),
        bc=bc.astype(jnp.float32),
        w_fused=w_fused.astype(jnp.bfloat16),
        w1c=w1c.astype(jnp.float32),
        b_fused=b_fused.reshape(1, 128).astype(jnp.float32),
        w2t=w2.T.astype(jnp.bfloat16),
        b2=b2.reshape(seg, 1).astype(jnp.float32),
    )


# ----------------------------------------------------------------------------
# Forward pass (get_global=False path).
# ----------------------------------------------------------------------------
def deformable_potr_seg_forward(params, x, cls_label):
    ops = prepare_operands(params)
    b, _, n = x.shape
    seg = ops["w2t"].shape[0]

    # 'b c n -> b n c'; pad channels 3->8 and points up to the tile multiple.
    xyz = jnp.transpose(x, (0, 2, 1))                               # (b, n, 3)
    tn = 1024 if n >= 1024 else ((n + 127) // 128) * 128
    n_pad = ((n + tn - 1) // tn) * tn
    xyz_p = jnp.pad(xyz, ((0, 0), (0, n_pad - n), (0, 5))).astype(jnp.bfloat16)

    # cls head (Linear(16,64)+BN+ReLU) + its fc1 contribution: tiny -> plain XLA.
    c = jnp.maximum(cls_label @ ops["wc"] + ops["bc"], 0.0)         # (b, 64)
    ccon = (c @ ops["w1c"] + ops["b_fused"]).reshape(b, 1, 128).astype(jnp.float32)

    out = pl.pallas_call(
        _fused_seg_kernel,
        out_shape=jax.ShapeDtypeStruct((b, seg, n_pad), jnp.float32),
        grid_spec=pltpu.PrefetchScalarGridSpec(
            num_scalar_prefetch=0,
            grid=(b, n_pad // tn),
            in_specs=[
                pl.BlockSpec((1, tn, 8), lambda bi, ti: (bi, ti, 0)),     # xyz
                pl.BlockSpec((1, 1, 128), lambda bi, ti: (bi, 0, 0)),     # ccon
                pl.BlockSpec((8, 32), lambda bi, ti: (0, 0)),             # w_emb
                pl.BlockSpec((1, 32), lambda bi, ti: (0, 0)),             # b_emb
                pl.BlockSpec((32, 128), lambda bi, ti: (0, 0)),           # w_fused
                pl.BlockSpec((seg, 128), lambda bi, ti: (0, 0)),          # w2t
                pl.BlockSpec((seg, 1), lambda bi, ti: (0, 0)),            # b2
            ],
            out_specs=pl.BlockSpec((1, seg, tn), lambda bi, ti: (bi, 0, ti)),
        ),
        compiler_params=pltpu.CompilerParams(
            dimension_semantics=("parallel", "parallel")),
    )(xyz_p, ccon, ops["w_emb"], ops["b_emb"], ops["w_fused"],
      ops["w2t"], ops["b2"])

    # Already (b, seg_num_all, n_pad); just trim the padded points.
    return out[:, :, :n]


# Pure-XLA reference mirroring the kernel math (same bf16 cast points).
def reference_forward(params, x, cls_label):
    ops = prepare_operands(params)
    xyz = jnp.transpose(x, (0, 2, 1)).astype(jnp.bfloat16)
    xyz = jnp.pad(xyz, ((0, 0), (0, 0), (0, 5)))                    # (b, n, 8)
    h = jnp.dot(xyz, ops["w_emb"], preferred_element_type=jnp.float32) + ops["b_emb"]
    h = jnp.maximum(h, 0.0)
    c = jnp.maximum(cls_label @ ops["wc"] + ops["bc"], 0.0)
    ccon = c @ ops["w1c"] + ops["b_fused"]                          # (b, 128)
    y = jnp.dot(h.astype(jnp.bfloat16), ops["w_fused"],
                preferred_element_type=jnp.float32)
    y = jnp.maximum(y + ccon[:, None, :], 0.0)
    logits = jnp.dot(y.astype(jnp.bfloat16), ops["w2t"].T,
                     preferred_element_type=jnp.float32) + ops["b2"].reshape(1, 1, -1)
    return jnp.transpose(logits, (0, 2, 1))                         # (b, seg, n)


if __name__ == "__main__":
    key = jax.random.PRNGKey(0)
    k_param, k_x, k_cls = jax.random.split(key, 3)

    B, N, SEG = 2, 1024, 16
    params = init_params(k_param, seg_num_all=SEG)

    x = jax.random.normal(k_x, (B, 3, N), jnp.float32)              # point cloud (b, c, n)
    cls_label = jax.nn.one_hot(
        jax.random.randint(k_cls, (B,), 0, 16), 16, dtype=jnp.float32)  # (b, 16)

    out = jax.jit(deformable_potr_seg_forward)(params, x, cls_label)
    out = jax.block_until_ready(out)
    assert out.shape == (B, SEG, N), out.shape

    ref = reference_forward(params, x, cls_label)
    err = float(jnp.max(jnp.abs(out - ref)))
    assert err < 1e-2, f"max abs err {err}"
    print("KERNEL_OK")
</pallas_src>

<mosaic_0001>
module attributes {stable_mosaic.version = 11 : i64} {
  func.func @_fused_seg_kernel(%arg0: i32, %arg1: i32, %arg2: memref<1x1024x8xbf16, #tpu.memory_space<vmem>>, %arg3: memref<1x1x128xf32, #tpu.memory_space<vmem>>, %arg4: memref<8x32xbf16, #tpu.memory_space<vmem>>, %arg5: memref<1x32xf32, #tpu.memory_space<vmem>>, %arg6: memref<32x128xbf16, #tpu.memory_space<vmem>>, %arg7: memref<16x128xbf16, #tpu.memory_space<vmem>>, %arg8: memref<16x1xf32, #tpu.memory_space<vmem>>, %arg9: memref<1x16x1024xf32, #tpu.memory_space<vmem>>) attributes {dimension_semantics = [#tpu.dimension_semantics<parallel>, #tpu.dimension_semantics<parallel>], iteration_bounds = array<i64: 2, 1>, scalar_prefetch = 0 : i64, scratch_operands = 0 : i64, tpu.core_type = #tpu.core_type<tc>, window_params = [{transform_indices = @transform_0, window_bounds = array<i64: 1, 1024, 8>}, {transform_indices = @transform_1, window_bounds = array<i64: 1, 1, 128>}, {pipeline_mode = #tpu.pipeline_mode<synchronous>, transform_indices = @transform_2, window_bounds = array<i64: 8, 32>}, {pipeline_mode = #tpu.pipeline_mode<synchronous>, transform_indices = @transform_3, window_bounds = array<i64: 1, 32>}, {pipeline_mode = #tpu.pipeline_mode<synchronous>, transform_indices = @transform_4, window_bounds = array<i64: 32, 128>}, {pipeline_mode = #tpu.pipeline_mode<synchronous>, transform_indices = @transform_5, window_bounds = array<i64: 16, 128>}, {pipeline_mode = #tpu.pipeline_mode<synchronous>, transform_indices = @transform_6, window_bounds = array<i64: 16, 1>}, {transform_indices = @transform_7, window_bounds = array<i64: 1, 16, 1024>}]} {
    %c0 = arith.constant 0 : index
    %c0_0 = arith.constant 0 : index
    %c0_1 = arith.constant 0 : index
    %0 = vector.load %arg2[%c0, %c0_0, %c0_1] : memref<1x1024x8xbf16, #tpu.memory_space<vmem>>, vector<1x1024x8xbf16>
    %1 = vector.shape_cast %0 : vector<1x1024x8xbf16> to vector<1024x8xbf16>
    %c0_2 = arith.constant 0 : index
    %c0_3 = arith.constant 0 : index
    %2 = vector.load %arg4[%c0_2, %c0_3] : memref<8x32xbf16, #tpu.memory_space<vmem>>, vector<8x32xbf16>
    %cst = arith.constant dense<0.000000e+00> : vector<1024x32xf32>
    %3 = tpu.matmul %1, %2, %cst {dimension_numbers = #tpu.dot_dimension_numbers<[1], [0], [0], [1], [0, 0, 1, 1], [], []>} : vector<1024x8xbf16>, vector<8x32xbf16>, vector<1024x32xf32> -> vector<1024x32xf32>
    %c0_4 = arith.constant 0 : index
    %c0_5 = arith.constant 0 : index
    %4 = vector.load %arg5[%c0_4, %c0_5] : memref<1x32xf32, #tpu.memory_space<vmem>>, vector<1x32xf32>
    %5 = vector.broadcast %4 : vector<1x32xf32> to vector<1024x32xf32>
    %6 = arith.addf %3, %5 : vector<1024x32xf32>
    %cst_6 = arith.constant 0.000000e+00 : f32
    %7 = vector.broadcast %cst_6 : f32 to vector<1024x32xf32>
    %8 = arith.maximumf %6, %7 : vector<1024x32xf32>
    %9 = arith.truncf %8 : vector<1024x32xf32> to vector<1024x32xbf16>
    %c0_7 = arith.constant 0 : index
    %c0_8 = arith.constant 0 : index
    %10 = vector.load %arg6[%c0_7, %c0_8] : memref<32x128xbf16, #tpu.memory_space<vmem>>, vector<32x128xbf16>
    %cst_9 = arith.constant dense<0.000000e+00> : vector<1024x128xf32>
    %11 = tpu.matmul %9, %10, %cst_9 {dimension_numbers = #tpu.dot_dimension_numbers<[1], [0], [0], [1], [0, 0, 1, 1], [], []>} : vector<1024x32xbf16>, vector<32x128xbf16>, vector<1024x128xf32> -> vector<1024x128xf32>
    %c0_10 = arith.constant 0 : index
    %c0_11 = arith.constant 0 : index
    %c0_12 = arith.constant 0 : index
    %12 = vector.load %arg3[%c0_10, %c0_11, %c0_12] : memref<1x1x128xf32, #tpu.memory_space<vmem>>, vector<1x1x128xf32>
    %13 = vector.shape_cast %12 : vector<1x1x128xf32> to vector<1x128xf32>
    %14 = vector.broadcast %13 : vector<1x128xf32> to vector<1024x128xf32>
    %15 = arith.addf %11, %14 : vector<1024x128xf32>
    %cst_13 = arith.constant 0.000000e+00 : f32
    %16 = vector.broadcast %cst_13 : f32 to vector<1024x128xf32>
    %17 = arith.maximumf %15, %16 : vector<1024x128xf32>
    %c0_14 = arith.constant 0 : index
    %c0_15 = arith.constant 0 : index
    %18 = vector.load %arg7[%c0_14, %c0_15] : memref<16x128xbf16, #tpu.memory_space<vmem>>, vector<16x128xbf16>
    %19 = arith.truncf %17 : vector<1024x128xf32> to vector<1024x128xbf16>
    %cst_16 = arith.constant dense<0.000000e+00> : vector<16x1024xf32>
    %20 = tpu.matmul %18, %19, %cst_16 {dimension_numbers = #tpu.dot_dimension_numbers<[1], [1], [0], [0], [0, 0, 1, 0], [], []>} : vector<16x128xbf16>, vector<1024x128xbf16>, vector<16x1024xf32> -> vector<16x1024xf32>
    %c0_17 = arith.constant 0 : index
    %c0_18 = arith.constant 0 : index
    %21 = vector.load %arg8[%c0_17, %c0_18] : memref<16x1xf32, #tpu.memory_space<vmem>>, vector<16x1xf32>
    %22 = vector.broadcast %21 : vector<16x1xf32> to vector<16x1024xf32>
    %23 = arith.addf %20, %22 : vector<16x1024xf32>
    %c0_19 = arith.constant 0 : index
    %c0_20 = arith.constant 0 : index
    %c0_21 = arith.constant 0 : index
    %24 = vector.load %arg9[%c0_19, %c0_20, %c0_21] : memref<1x16x1024xf32, #tpu.memory_space<vmem>>, vector<1x16x1024xf32>
    %25 = vector.shape_cast %24 : vector<1x16x1024xf32> to vector<16x1024xf32>
    %26 = vector.shape_cast %23 : vector<16x1024xf32> to vector<1x16x1024xf32>
    tpu.vector_store %arg9[%c0_19, %c0_20, %c0_21], %26 {strides = array<i32>} : memref<1x16x1024xf32, #tpu.memory_space<vmem>>, vector<1x16x1024xf32>,
    return
  }
  func.func @transform_0(%arg0: i32, %arg1: i32) -> (i32, i32, i32) {
    %c0_i32 = arith.constant 0 : i32
    %c0_i32_0 = arith.constant 0 : i32
    return %arg0, %arg1, %c0_i32 : i32, i32, i32
  }
  func.func @transform_1(%arg0: i32, %arg1: i32) -> (i32, i32, i32) {
    %c0_i32 = arith.constant 0 : i32
    %c0_i32_0 = arith.constant 0 : i32
    %c0_i32_1 = arith.constant 0 : i32
    return %arg0, %c0_i32, %c0_i32_0 : i32, i32, i32
  }
  func.func @transform_2(%arg0: i32, %arg1: i32) -> (i32, i32) {
    %c0_i32 = arith.constant 0 : i32
    %c0_i32_0 = arith.constant 0 : i32
    %c0_i32_1 = arith.constant 0 : i32
    return %c0_i32, %c0_i32_0 : i32, i32
  }
  func.func @transform_3(%arg0: i32, %arg1: i32) -> (i32, i32) {
    %c0_i32 = arith.constant 0 : i32
    %c0_i32_0 = arith.constant 0 : i32
    %c0_i32_1 = arith.constant 0 : i32
    return %c0_i32, %c0_i32_0 : i32, i32
  }
  func.func @transform_4(%arg0: i32, %arg1: i32) -> (i32, i32) {
    %c0_i32 = arith.constant 0 : i32
    %c0_i32_0 = arith.constant 0 : i32
    %c0_i32_1 = arith.constant 0 : i32
    return %c0_i32, %c0_i32_0 : i32, i32
  }
  func.func @transform_5(%arg0: i32, %arg1: i32) -> (i32, i32) {
    %c0_i32 = arith.constant 0 : i32
    %c0_i32_0 = arith.constant 0 : i32
    %c0_i32_1 = arith.constant 0 : i32
    return %c0_i32, %c0_i32_0 : i32, i32
  }
  func.func @transform_6(%arg0: i32, %arg1: i32) -> (i32, i32) {
    %c0_i32 = arith.constant 0 : i32
    %c0_i32_0 = arith.constant 0 : i32
    %c0_i32_1 = arith.constant 0 : i32
    return %c0_i32, %c0_i32_0 : i32, i32
  }
  func.func @transform_7(%arg0: i32, %arg1: i32) -> (i32, i32, i32) {
    %c0_i32 = arith.constant 0 : i32
    %c0_i32_0 = arith.constant 0 : i32
    return %arg0, %c0_i32, %arg1 : i32, i32, i32
  }
}

</mosaic_0001>

<bundles_post_ra>
// kernel: deformable_potr_seg_forward.1
= control target key start
LH: loop header
LB: loop body
LE: loop exit
PB: predicated region body
PF: predicated region fallthrough
CT: control target
= control target key end

     0   :  { %12 = vsyncpa [#allocation3], 0  ;;  %s4002_s0 = inlined_call_operand.vmem [shape: bf16[2,1024,8], index: 0, kind: input, shape index: {}]   ;;  %s4003_s1 = inlined_call_operand.vmem [shape: f32[2,1,128], index: 1, kind: input, shape index: {}]   ;;  %s4004_s2 = inlined_call_operand.vmem [shape: bf16[8,32], index: 2, kind: input, shape index: {}]   ;;  %s4005_s3 = inlined_call_operand.vmem [shape: f32[1,32], index: 3, kind: input, shape index: {}]   ;;  %s4006_s4 = inlined_call_operand.vmem [shape: bf16[32,128], index: 4, kind: input, shape index: {}]   ;;  %s4007_s5 = inlined_call_operand.vmem [shape: bf16[16,128], index: 5, kind: input, shape index: {}]   ;;  %s4008_s6 = inlined_call_operand.vmem [shape: f32[16,1], index: 6, kind: input, shape index: {}]   ;;  %s4009_s7 = inlined_call_operand.hbm [shape: f32[2,16,1024], index: 7, kind: output, shape index: {}]  }
   0x1   :  { %14 = vsyncpa [#allocation3 + $0x1], 0  ;;  %s3150_s24 = smov 0   ;;  %s3152_s25 = smov 0  }
   0x2   :  { %s3154_s26 = smov 0   ;;  %s3156_s27 = smov 0  }
   0x3   :  { %s3158_s28 = smov 0   ;;  %s3160_s29 = smov 0  }
   0x4 LB: > { %s2482_s30 = sadd.s32 4294967295, %s3105_s29   ;;  %s2483_s8 = sadd.s32 4294967294, %s3105_s29   ;;  %s3105_s29 = sphi %s3160_s29, %s20_s29   ;;  %s3101_s28 = sphi %s3158_s28, %s4016_s28   ;;  %s3097_s27 = sphi %s3156_s27, %s4015_s27   ;;  %s3093_s26 = sphi %s3154_s26, %s4014_s26   ;;  %s3089_s25 = sphi %s3152_s25, %s4013_s25   ;;  %s3085_s24 = sphi %s3150_s24, %s4012_s24  }
   0x5   : > { %s32_s9 = sadd.s32 1, %s3101_s28  ;;  %s200_s10 = sadd.s32 1, %s3093_s26 }
   0x6   : > { %p34_p0 = scmp.ge.s32.totalorder %s32_s9, 2  ;;  %p210_p1 = scmp.ne.s32.totalorder %s3093_s26, %s3089_s25 }
   0x7   : > { %p211_p2 = scmp.eq.s32.totalorder %s2482_s30, 1  ;;  %p216_p3 = scmp.ne.s32.totalorder %s3089_s25, %s3085_s24 }
   0x8   : > { %s4018_s9 = smov (%p34_p0, %s32_s9), 0  ;;  %p217_p5 = scmp.eq.s32.totalorder %s2483_s8, 1 }
   0x9   : > { %p3190_p4 = por %p211_p2, %p210_p1  ;;  %s195_s12 = ssub.s32 %s3101_s28, %s4018_s9 }
   0xa   : > { %p2486_p6 = scmp.ge.s32.totalorder %s3105_s29, 1  ;;  %p198_p7 = scmp.eq.s32.totalorder %s195_s12, 0 }
   0xb   : > { %p3197_p8 = por %p217_p5, %p216_p3  ;;  %p269_p9 = scmp.lt.s32.totalorder %s3105_s29, 3 }
   0xc   : > { %s3203_s14 = scalar_select %p198_p7, %s3093_s26, %s200_s10  }
   0xd   : > { %p270_p10 = pnand %p2486_p6, %p269_p9 }
   0xe   : > { %p309_p11 = scmp.lt.s32.totalorder (!%p270_p10), %s3097_s27, 1  ;;  %s305_s12 = sand.u32 (!%p270_p10), 1, %s3089_s25  }
   0xf   : > { %273 = sbr.rel (%p270_p10) target bundleno = 1202 (0x4b2), region = 48  ;;  %s2487_s15 = sshll.u32 (!%p270_p10), %s305_s12, 7 }
  0x10   : > { %s2959_s16 = sshll.u32 (!%p270_p10), %s3097_s27, 7  ;;  %s2377_s23 = scalar_lea.sflag (!%p270_p10), [#allocation3], %s305_s12 }
  0x11   : > { %s2390_s19 = scalar_lea.hbm (!%p270_p10), %s4009_s7, %s2959_s16 }
  0x12   : > { %s2393_s22 = sshll.u32 (!%p270_p10), %s2390_s19, 4  ;;  %s2394_s22 = int_to_ptr.hbm [resolvable:$true] %s2393_s22 }
  0x14   : > { %v451_v0 = vld [vmem:[%s4004_s2] sm:$0xf]  ;;  %vm969_vm0 = vcmask 1043456   ;;  %s310_s17 = scalar_select %p309_p11, %s3097_s27, 1  ;;  %vm776_vm1 = vcmask 64512   ;;  %v2957_v9 = vld [vmem:[%s4006_s4 + $0x8] sm:$0xff] }
  0x15   : > { %v971_v1 = vsel %vm969_vm0, %v451_v0, 0  ;;  %1713 = vmatpush.bf16.msra.mxu1 %v2957_v9  ;;  %2961 = vmatpush.bf16.msra.mxu2 %v2957_v9  ;;  %v2956_v10 = vld [vmem:[%s4006_s4] sm:$0xff]  ;;  %vm1514_vm2 = vcmask 261120  }
  0x16   : > { %980 = vmatpush.bf16.msra.mxu0 %v971_v1  ;;  %2960 = vmatpush.bf16.msra.mxu3 %v971_v1  ;;  %s2891_s18 = sshll.u32 %s310_s17, 9  ;;  %s3213_s21 = scalar_lea.vmem %s4003_s1, %s310_s17  ;;  %v3246_v14 = vld [vmem:[%s4005_s3] ss:$0 sm:$0xff] }
  0x17   : > { %s3218_s30 = scalar_lea.vmem %s4002_s0, %s2891_s18 }
  0x18   : > { %v2892_v2 = vld [vmem:[%s3218_s30] sm:$0xff]  ;;  %v2893_v3 = vld [vmem:[%s3218_s30 + $0x8] sm:$0xff]  ;;  %v2894_v4 = vld [vmem:[%s3218_s30 + $0x10] sm:$0xff] }
  0x19   : > { %2746 = vmatmul.msk.bf16.vlgmr.msra.gmra.mxu0 %vm776_vm1, %v2892_v2  ;;  %v2895_v5 = vld [vmem:[%s3218_s30 + $0x18] sm:$0xff]  ;;  %v2896_v6 = vld [vmem:[%s3218_s30 + $0x20] sm:$0xff]  ;;  %v2897_v7 = vld [vmem:[%s3218_s30 + $0x28] sm:$0xff]  ;;  %1714 = vmatpush.bf16.msra.mxu1 %v2956_v10 }
  0x1a   : > { %v2898_v8 = vld [vmem:[%s3218_s30 + $0x30] sm:$0xff]  ;;  %2962 = vmatpush.bf16.msra.mxu2 %v2956_v10  ;;  %v2899_v11 = vld [vmem:[%s3218_s30 + $0x38] sm:$0xff]  ;;  %v2900_v12 = vld [vmem:[%s3218_s30 + $0x40] sm:$0xff] }
  0x1b   : > { %v2901_v21 = vld [vmem:[%s3218_s30 + $0x48] sm:$0xff]  ;;  %v2902_v29 = vld [vmem:[%s3218_s30 + $0x50] sm:$0xff]  ;;  %v2903_v37 = vld [vmem:[%s3218_s30 + $0x58] sm:$0xff] }
  0x1c   : > { %v2931_v40 = vld [vmem:[%s3218_s30 + $0x138] sm:$0xff]  ;;  %v2904_v46 = vld [vmem:[%s3218_s30 + $0x60] sm:$0xff]  ;;  %v2905_v55 = vld [vmem:[%s3218_s30 + $0x68] sm:$0xff] }
  0x1d   : > { %2785 = vmatmul.msk.bf16.vlgmr.msra.gmra.mxu3 %vm776_vm1, %v2931_v40  ;;  %v2932_v49 = vld [vmem:[%s3218_s30 + $0x140] sm:$0xff]  ;;  %v2933_v58 = vld [vmem:[%s3218_s30 + $0x148] sm:$0xff]  ;;  %v2906_v0 = vld [vmem:[%s3218_s30 + $0x70] sm:$0xff] }
  0x1e   : > { %v2907_v9 = vld [vmem:[%s3218_s30 + $0x78] sm:$0xff] }
  0x29   : > { %2747 = vmatmul.msk.bf16.gmra.mxu0 %vm776_vm1, %v2893_v3  ;;  %v2934_v3 = vld [vmem:[%s3218_s30 + $0x150] sm:$0xff] }
  0x2d   : > { %2786 = vmatmul.msk.bf16.gmra.mxu3 %vm776_vm1, %v2932_v49 }
  0x39   : > { %2748 = vmatmul.msk.bf16.gmra.mxu0 %vm776_vm1, %v2894_v4 }
  0x3d   : > { %2787 = vmatmul.msk.bf16.gmra.mxu3 %vm776_vm1, %v2933_v58 }
  0x49   : > { %2749 = vmatmul.msk.bf16.gmra.mxu0 %vm776_vm1, %v2895_v5 }
  0x4d   : > { %2788 = vmatmul.msk.bf16.gmra.mxu3 %vm776_vm1, %v2934_v3 }
  0x59   : > { %2750 = vmatmul.msk.bf16.gmra.mxu0 %vm776_vm1, %v2896_v6 }
  0x69   : > { %2751 = vmatmul.msk.bf16.gmra.mxu0 %vm776_vm1, %v2897_v7 }
  0x79   : > { %2752 = vmatmul.msk.bf16.gmra.mxu0 %vm776_vm1, %v2898_v8 }
  0x89   : > { %2753 = vmatmul.msk.bf16.gmra.mxu0 %vm776_vm1, %v2899_v11 }
  0x96   : > { %v982_v13 = vpop.f32.mrf.mxu0 }
  0x97   : > { %v983_v15 = vadd.f32 %v3246_v14, %v982_v13 }
  0x99   : > { %2754 = vmatmul.msk.bf16.gmra.mxu0 %vm776_vm1, %v2900_v12  ;;  %v1302_v18 = vmax.f32 %v983_v15, 0.0  ;;  %v2935_v12 = vld [vmem:[%s3218_s30 + $0x158] sm:$0xff] }
  0x9a   : > { %2789 = vmatmul.msk.bf16.gmra.mxu3 %vm776_vm1, %v2935_v12 }
  0x9e   : > { %v984_v16 = vpop.f32.mrf.mxu0 }
  0x9f   : > { %v985_v17 = vadd.f32 %v3246_v14, %v984_v16 }
  0xa1   : > { %v1303_v19 = vmax.f32 %v985_v17, 0.0 }
  0xa3   : > { %v1430_v20 = vpack.c.bf16 %v1303_v19, %v1302_v18  ;;  %v2908_v19 = vld [vmem:[%s3218_s30 + $0x80] sm:$0xff] }
  0xa5   : > { %2818 = vmatmul.msk.bf16.vlgmr.msra.gmra.mxu1 %vm1514_vm2, %v1430_v20 }
  0xa6   : > { %v987_v22 = vpop.f32.mrf.mxu0 }
  0xa7   : > { %v988_v23 = vadd.f32 %v3246_v14, %v987_v22  ;;  %v2936_v22 = vld [vmem:[%s3218_s30 + $0x160] sm:$0xff] }
  0xa9   : > { %2755 = vmatmul.msk.bf16.gmra.mxu0 %vm776_vm1, %v2901_v21  ;;  %v1304_v26 = vmax.f32 %v988_v23, 0.0 }
  0xaa   : > { %2790 = vmatmul.msk.bf16.gmra.mxu3 %vm776_vm1, %v2936_v22 }
  0xae   : > { %v989_v24 = vpop.f32.mrf.mxu0 }
  0xaf   : > { %v990_v25 = vadd.f32 %v3246_v14, %v989_v24 }
  0xb1   : > { %v1305_v27 = vmax.f32 %v990_v25, 0.0 }
  0xb3   : > { %v1431_v28 = vpack.c.bf16 %v1305_v27, %v1304_v26 }
  0xb5   : > { %2819 = vmatmul.msk.bf16.gmra.mxu1 %vm1514_vm2, %v1431_v28 }
  0xb6   : > { %v992_v30 = vpop.f32.mrf.mxu0 }
  0xb7   : > { %v993_v31 = vadd.f32 %v3246_v14, %v992_v30  ;;  %v2909_v30 = vld [vmem:[%s3218_s30 + $0x88] sm:$0xff] }
  0xb9   : > { %2756 = vmatmul.msk.bf16.gmra.mxu0 %vm776_vm1, %v2902_v29  ;;  %v1306_v34 = vmax.f32 %v993_v31, 0.0  ;;  %v3304_v29 = vld [vmem:[%s3213_s21] ss:$0 sm:$0xff] }
  0xbe   : > { %v994_v32 = vpop.f32.mrf.mxu0 }
  0xbf   : > { %v995_v33 = vadd.f32 %v3246_v14, %v994_v32 }
  0xc1   : > { %v1307_v35 = vmax.f32 %v995_v33, 0.0 }
  0xc3   : > { %v1432_v36 = vpack.c.bf16 %v1307_v35, %v1306_v34 }
  0xc5   : > { %2820 = vmatmul.msk.bf16.gmra.mxu1 %vm1514_vm2, %v1432_v36 }
  0xc6   : > { %v997_v38 = vpop.f32.mrf.mxu0 }
  0xc7   : > { %v998_v39 = vadd.f32 %v3246_v14, %v997_v38  ;;  %v2937_v38 = vld [vmem:[%s3218_s30 + $0x168] sm:$0xff] }
  0xc8   : > { %2791 = vmatmul.msk.bf16.gmra.mxu3 %vm776_vm1, %v2937_v38 }
  0xc9   : > { %2757 = vmatmul.msk.bf16.gmra.mxu0 %vm776_vm1, %v2903_v37  ;;  %v1308_v43 = vmax.f32 %v998_v39, 0.0 }
  0xce   : > { %v999_v41 = vpop.f32.mrf.mxu0 }
  0xcf   : > { %v1000_v42 = vadd.f32 %v3246_v14, %v999_v41 }
  0xd1   : > { %v1309_v44 = vmax.f32 %v1000_v42, 0.0 }
  0xd3   : > { %v1433_v45 = vpack.c.bf16 %v1309_v44, %v1308_v43 }
  0xd5   : > { %2821 = vmatmul.msk.bf16.gmra.mxu1 %vm1514_vm2, %v1433_v45 }
  0xd6   : > { %v1002_v47 = vpop.f32.mrf.mxu0 }
  0xd7   : > { %v1003_v48 = vadd.f32 %v3246_v14, %v1002_v47 }
  0xd9   : > { %2758 = vmatmul.msk.bf16.gmra.mxu0 %vm776_vm1, %v2904_v46  ;;  %v1310_v52 = vmax.f32 %v1003_v48, 0.0  ;;  %v2910_v46 = vld [vmem:[%s3218_s30 + $0x90] sm:$0xff] }
  0xde   : > { %v1004_v50 = vpop.f32.mrf.mxu0 }
  0xdf   : > { %v1005_v51 = vadd.f32 %v3246_v14, %v1004_v50 }
  0xe1   : > { %v1311_v53 = vmax.f32 %v1005_v51, 0.0 }
  0xe3   : > { %v1434_v54 = vpack.c.bf16 %v1311_v53, %v1310_v52 }
  0xe5   : > { %2822 = vmatmul.msk.bf16.gmra.mxu1 %vm1514_vm2, %v1434_v54  ;;  %v2938_v54 = vld [vmem:[%s3218_s30 + $0x170] sm:$0xff] }
  0xe6   : > { %v1007_v56 = vpop.f32.mrf.mxu0  ;;  %2792 = vmatmul.msk.bf16.gmra.mxu3 %vm776_vm1, %v2938_v54  ;;  %v2941_v54 = vld [vmem:[%s3218_s30 + $0x188] sm:$0xff] }
  0xe7   : > { %v1008_v57 = vadd.f32 %v3246_v14, %v1007_v56 }
  0xe9   : > { %2759 = vmatmul.msk.bf16.gmra.mxu0 %vm776_vm1, %v2905_v55  ;;  %v1312_v61 = vmax.f32 %v1008_v57, 0.0 }
  0xee   : > { %v1009_v59 = vpop.f32.mrf.mxu0 }
  0xef   : > { %v1010_v60 = vadd.f32 %v3246_v14, %v1009_v59 }
  0xf1   : > { %v1313_v62 = vmax.f32 %v1010_v60, 0.0 }
  0xf3   : > { %v1435_v63 = vpack.c.bf16 %v1313_v62, %v1312_v61  ;;  %v2911_v62 = vld [vmem:[%s3218_s30 + $0x98] sm:$0xff] }
  0xf5   : > { %2823 = vmatmul.msk.bf16.gmra.mxu1 %vm1514_vm2, %v1435_v63 }
  0xf6   : > { %v1012_v1 = vpop.f32.mrf.mxu0 }
  0xf7   : > { %v1013_v2 = vadd.f32 %v3246_v14, %v1012_v1 }
  0xf9   : > { %2760 = vmatmul.msk.bf16.gmra.mxu0 %vm776_vm1, %v2906_v0  ;;  %v1314_v6 = vmax.f32 %v1013_v2, 0.0 }
  0xfe   : > { %v1014_v4 = vpop.f32.mrf.mxu0 }
  0xff   : > { %v1015_v5 = vadd.f32 %v3246_v14, %v1014_v4 }
 0x101   : > { %v1315_v7 = vmax.f32 %v1015_v5, 0.0 }
 0x103   : > { %v1436_v8 = vpack.c.bf16 %v1315_v7, %v1314_v6  ;;  %v2939_v6 = vld [vmem:[%s3218_s30 + $0x178] sm:$0xff] }
 0x104   : > { %2793 = vmatmul.msk.bf16.gmra.mxu3 %vm776_vm1, %v2939_v6 }
 0x105   : > { %2824 = vmatmul.msk.bf16.gmra.mxu1 %vm1514_vm2, %v1436_v8 }
 0x106   : > { %v1017_v10 = vpop.f32.mrf.mxu0 }
 0x107   : > { %v1018_v11 = vadd.f32 %v3246_v14, %v1017_v10 }
 0x109   : > { %2761 = vmatmul.msk.bf16.gmra.mxu0 %vm776_vm1, %v2907_v9  ;;  %v1316_v16 = vmax.f32 %v1018_v11, 0.0 }
 0x10e   : > { %v1019_v13 = vpop.f32.mrf.mxu0 }
 0x10f   : > { %v1020_v15 = vadd.f32 %v3246_v14, %v1019_v13  ;;  %v1177_v13 = vpop.f32.mrf.mxu3 }
 0x111   : > { %v1317_v17 = vmax.f32 %v1020_v15, 0.0 }
 0x113   : > { %v1437_v18 = vpack.c.bf16 %v1317_v17, %v1316_v16  ;;  %v2912_v16 = vld [vmem:[%s3218_s30 + $0xa0] sm:$0xff] }
 0x115   : > { %2825 = vmatmul.msk.bf16.gmra.mxu1 %vm1514_vm2, %v1437_v18  ;;  %v1178_v18 = vadd.f32 %v3246_v14, %v1177_v13 }
 0x116   : > { %v1022_v20 = vpop.f32.mrf.mxu0 }
 0x117   : > { %v1023_v21 = vadd.f32 %v3246_v14, %v1022_v20 }
 0x119   : > { %2762 = vmatmul.msk.bf16.gmra.mxu0 %vm776_vm1, %v2908_v19  ;;  %v1318_v25 = vmax.f32 %v1023_v21, 0.0  ;;  %v1179_v21 = vpop.f32.mrf.mxu3 }
 0x11e   : > { %v1024_v23 = vpop.f32.mrf.mxu0 }
 0x11f   : > { %v1025_v24 = vadd.f32 %v3246_v14, %v1024_v23  ;;  %v1380_v23 = vmax.f32 %v1178_v18, 0.0 }
 0x121   : > { %v1319_v26 = vmax.f32 %v1025_v24, 0.0  ;;  %v1180_v24 = vadd.f32 %v3246_v14, %v1179_v21  ;;  %v1182_v38 = vpop.f32.mrf.mxu3  ;;  %v2915_v21 = vld [vmem:[%s3218_s30 + $0xb8] sm:$0xff] }
 0x122   : > { %v1716_v27 = vpop.f32.mrf.mxu1 }
 0x123   : > { %v1438_v28 = vpack.c.bf16 %v1319_v26, %v1318_v25  ;;  %v1717_v32 = vadd.f32 %v3304_v29, %v1716_v27 }
 0x125   : > { %2826 = vmatmul.msk.bf16.gmra.mxu1 %vm1514_vm2, %v1438_v28  ;;  %v2036_v35 = vmax.f32 %v1717_v32, 0.0  ;;  %v1381_v28 = vmax.f32 %v1180_v24, 0.0 }
 0x126   : > { %v1027_v31 = vpop.f32.mrf.mxu0 }
 0x127   : > { %v1028_v36 = vadd.f32 %v3246_v14, %v1027_v31 }
 0x129   : > { %2763 = vmatmul.msk.bf16.gmra.mxu0 %vm776_vm1, %v2909_v30  ;;  %v1320_v42 = vmax.f32 %v1028_v36, 0.0  ;;  %v2940_v30 = vld [vmem:[%s3218_s30 + $0x180] sm:$0xff] }
 0x12a   : > { %v1718_v33 = vpop.f32.mrf.mxu1  ;;  %2794 = vmatmul.msk.bf16.gmra.mxu3 %vm776_vm1, %v2940_v30 }
 0x12b   : > { %v1719_v34 = vadd.f32 %v3304_v29, %v1718_v33  ;;  %v3349_v33 = vpack.c.bf16 %v1381_v28, %v1380_v23 }
 0x12d   : > { %v2037_v37 = vmax.f32 %v1719_v34, 0.0 }
 0x12e   : > { %v1029_v39 = vpop.f32.mrf.mxu0 }
 0x12f   : > { %v1030_v40 = vadd.f32 %v3246_v14, %v1029_v39  ;;  %v3315_v41 = vpack.c.bf16 %v2037_v37, %v2036_v35 }
 0x131   : > { %v1321_v43 = vmax.f32 %v1030_v40, 0.0  ;;  %v2913_v40 = vld [vmem:[%s3218_s30 + $0xa8] sm:$0xff] }
 0x132   : > { %v1721_v44 = vpop.f32.mrf.mxu1 }
 0x133   : > { %v1439_v45 = vpack.c.bf16 %v1321_v43, %v1320_v42  ;;  %v1722_v48 = vadd.f32 %v3304_v29, %v1721_v44  ;;  %v1183_v43 = vadd.f32 %v3246_v14, %v1182_v38 }
 0x135   : > { %2827 = vmatmul.msk.bf16.gmra.mxu1 %vm1514_vm2, %v1439_v45  ;;  %v2038_v51 = vmax.f32 %v1722_v48, 0.0  ;;  %v1382_v48 = vmax.f32 %v1183_v43, 0.0  ;;  %v2916_v43 = vld [vmem:[%s3218_s30 + $0xc0] sm:$0xff] }
 0x136   : > { %v1032_v47 = vpop.f32.mrf.mxu0 }
 0x137   : > { %v1033_v52 = vadd.f32 %v3246_v14, %v1032_v47 }
 0x139   : > { %2764 = vmatmul.msk.bf16.gmra.mxu0 %vm776_vm1, %v2910_v46  ;;  %v1322_v58 = vmax.f32 %v1033_v52, 0.0  ;;  %v1184_v46 = vpop.f32.mrf.mxu3 }
 0x13a   : > { %v1723_v49 = vpop.f32.mrf.mxu1  ;;  %2795 = vmatmul.msk.bf16.gmra.mxu3 %vm776_vm1, %v2941_v54 }
 0x13b   : > { %v1724_v50 = vadd.f32 %v3304_v29, %v1723_v49  ;;  %v1185_v49 = vadd.f32 %v3246_v14, %v1184_v46 }
 0x13d   : > { %v2039_v53 = vmax.f32 %v1724_v50, 0.0 }
 0x13e   : > { %v1034_v55 = vpop.f32.mrf.mxu0 }
 0x13f   : > { %v1035_v56 = vadd.f32 %v3246_v14, %v1034_v55  ;;  %v3326_v57 = vpack.c.bf16 %v2039_v53, %v2038_v51  ;;  %v1383_v53 = vmax.f32 %v1185_v49, 0.0 }
 0x141   : > { %v1323_v59 = vmax.f32 %v1035_v56, 0.0 }
 0x142   : > { %v1726_v60 = vpop.f32.mrf.mxu1 }
 0x143   : > { %v1440_v61 = vpack.c.bf16 %v1323_v59, %v1322_v58  ;;  %v1727_v0 = vadd.f32 %v3304_v29, %v1726_v60  ;;  %v1470_v58 = vpack.c.bf16 %v1383_v53, %v1382_v48 }
 0x145   : > { %2828 = vmatmul.msk.bf16.gmra.mxu1 %vm1514_vm2, %v1440_v61  ;;  %v2040_v3 = vmax.f32 %v1727_v0, 0.0  ;;  %2858 = vmatmul.msk.bf16.vlgmr.msra.gmra.mxu2 %vm1514_vm2, %v1470_v58 }
 0x146   : > { %v1037_v63 = vpop.f32.mrf.mxu0 }
 0x147   : > { %v1038_v4 = vadd.f32 %v3246_v14, %v1037_v63  ;;  %v1187_v63 = vpop.f32.mrf.mxu3 }
 0x149   : > { %2765 = vmatmul.msk.bf16.gmra.mxu0 %vm776_vm1, %v2911_v62  ;;  %v1324_v10 = vmax.f32 %v1038_v4, 0.0 }
 0x14a   : > { %v1728_v1 = vpop.f32.mrf.mxu1 }
 0x14b   : > { %v1729_v2 = vadd.f32 %v3304_v29, %v1728_v1  ;;  %v2914_v1 = vld [vmem:[%s3218_s30 + $0xb0] sm:$0xff] }
 0x14d   : > { %v2041_v5 = vmax.f32 %v1729_v2, 0.0 }
 0x14e   : > { %v1039_v7 = vpop.f32.mrf.mxu0 }
 0x14f   : > { %v1040_v8 = vadd.f32 %v3246_v14, %v1039_v7  ;;  %v3337_v9 = vpack.c.bf16 %v2041_v5, %v2040_v3  ;;  %v1188_v3 = vadd.f32 %v3246_v14, %v1187_v63  ;;  %v1189_v5 = vpop.f32.mrf.mxu3 }
 0x150   : > { %v1190_v7 = vadd.f32 %v3246_v14, %v1189_v5 }
 0x151   : > { %v1325_v11 = vmax.f32 %v1040_v8, 0.0  ;;  %v1384_v6 = vmax.f32 %v1188_v3, 0.0 }
 0x152   : > { %v1731_v12 = vpop.f32.mrf.mxu1 }
 0x153   : > { %v1441_v15 = vpack.c.bf16 %v1325_v11, %v1324_v10  ;;  %v1732_v19 = vadd.f32 %v3304_v29, %v1731_v12  ;;  %v1385_v10 = vmax.f32 %v1190_v7, 0.0  ;;  %v2942_v11 = vld [vmem:[%s3218_s30 + $0x190] sm:$0xff] }
 0x154   : > { %2796 = vmatmul.msk.bf16.gmra.mxu3 %vm776_vm1, %v2942_v11  ;;  %v2917_v11 = vld [vmem:[%s3218_s30 + $0xc8] sm:$0xff] }
 0x155   : > { %2829 = vmatmul.msk.bf16.gmra.mxu1 %vm1514_vm2, %v1441_v15  ;;  %v2042_v25 = vmax.f32 %v1732_v19, 0.0  ;;  %v1471_v15 = vpack.c.bf16 %v1385_v10, %v1384_v6 }
 0x156   : > { %v1042_v17 = vpop.f32.mrf.mxu0 }
 0x157   : > { %v1043_v26 = vadd.f32 %v3246_v14, %v1042_v17  ;;  %2859 = vmatmul.msk.bf16.gmra.mxu2 %vm1514_vm2, %v1471_v15  ;;  %v1192_v19 = vpop.f32.mrf.mxu3 }
 0x158   : > { %v1193_v23 = vadd.f32 %v3246_v14, %v1192_v19 }
 0x159   : > { %2766 = vmatmul.msk.bf16.gmra.mxu0 %vm776_vm1, %v2912_v16  ;;  %v1326_v35 = vmax.f32 %v1043_v26, 0.0 }
 0x15a   : > { %v1733_v20 = vpop.f32.mrf.mxu1  ;;  %v1386_v26 = vmax.f32 %v1193_v23, 0.0 }
 0x15b   : > { %v1734_v22 = vadd.f32 %v3304_v29, %v1733_v20 }
 0x15d   : > { %v2043_v27 = vmax.f32 %v1734_v22, 0.0 }
 0x15e   : > { %v1044_v31 = vpop.f32.mrf.mxu0 }
 0x15f   : > { %v1045_v32 = vadd.f32 %v3246_v14, %v1044_v31  ;;  %v3352_v34 = vpack.c.bf16 %v2043_v27, %v2042_v25  ;;  %v1194_v25 = vpop.f32.mrf.mxu3  ;;  %v2943_v31 = vld [vmem:[%s3218_s30 + $0x198] sm:$0xff] }
 0x160   : > { %v1195_v27 = vadd.f32 %v3246_v14, %v1194_v25 }
 0x161   : > { %v1327_v36 = vmax.f32 %v1045_v32, 0.0 }
 0x162   : > { %v1736_v37 = vpop.f32.mrf.mxu1  ;;  %v1387_v30 = vmax.f32 %v1195_v27, 0.0 }
 0x163   : > { %v1442_v39 = vpack.c.bf16 %v1327_v36, %v1326_v35  ;;  %v1737_v44 = vadd.f32 %v3304_v29, %v1736_v37 }
 0x164   : > { %2797 = vmatmul.msk.bf16.gmra.mxu3 %vm776_vm1, %v2943_v31  ;;  %v1472_v36 = vpack.c.bf16 %v1387_v30, %v1386_v26 }
 0x165   : > { %2830 = vmatmul.msk.bf16.gmra.mxu1 %vm1514_vm2, %v1442_v39  ;;  %v2044_v50 = vmax.f32 %v1737_v44, 0.0 }
 0x166   : > { %v1047_v42 = vpop.f32.mrf.mxu0 }
 0x167   : > { %v1048_v51 = vadd.f32 %v3246_v14, %v1047_v42  ;;  %2860 = vmatmul.msk.bf16.gmra.mxu2 %vm1514_vm2, %v1472_v36 }
 0x169   : > { %2767 = vmatmul.msk.bf16.gmra.mxu0 %vm776_vm1, %v2913_v40  ;;  %v1328_v60 = vmax.f32 %v1048_v51, 0.0  ;;  %v1197_v40 = vpop.f32.mrf.mxu3 }
 0x16a   : > { %v1738_v45 = vpop.f32.mrf.mxu1 }
 0x16b   : > { %v1739_v47 = vadd.f32 %v3304_v29, %v1738_v45  ;;  %v1198_v45 = vadd.f32 %v3246_v14, %v1197_v40 }
 0x16d   : > { %v2045_v52 = vmax.f32 %v1739_v47, 0.0 }
 0x16e   : > { %v1049_v55 = vpop.f32.mrf.mxu0 }
 0x16f   : > { %v1050_v56 = vadd.f32 %v3246_v14, %v1049_v55  ;;  %v3365_v59 = vpack.c.bf16 %v2045_v52, %v2044_v50  ;;  %v1388_v50 = vmax.f32 %v1198_v45, 0.0 }
 0x171   : > { %v1329_v61 = vmax.f32 %v1050_v56, 0.0  ;;  %v1199_v48 = vpop.f32.mrf.mxu3  ;;  %v2944_v56 = vld [vmem:[%s3218_s30 + $0x1a0] sm:$0xff] }
 0x172   : > { %v3368_v62 = vpop.f32.mrf.mxu1  ;;  %v1200_v51 = vadd.f32 %v3246_v14, %v1199_v48 }
 0x173   : > { %v1443_v0 = vpack.c.bf16 %v1329_v61, %v1328_v60 }
 0x174   : > { %v1389_v55 = vmax.f32 %v1200_v51, 0.0  ;;  %2798 = vmatmul.msk.bf16.gmra.mxu3 %vm776_vm1, %v2944_v56  ;;  %v2946_v56 = vld [vmem:[%s3218_s30 + $0x1b0] sm:$0xff] }
 0x175   : > { %2831 = vmatmul.msk.bf16.gmra.mxu1 %vm1514_vm2, %v1443_v0 }
 0x176   : > { %v1052_v2 = vpop.f32.mrf.mxu0  ;;  %v1473_v0 = vpack.c.bf16 %v1389_v55, %v1388_v50 }
 0x177   : > { %v1053_v8 = vadd.f32 %v3246_v14, %v1052_v2 }
 0x178   : > { %2861 = vmatmul.msk.bf16.gmra.mxu2 %vm1514_vm2, %v1473_v0 }
 0x179   : > { %2768 = vmatmul.msk.bf16.gmra.mxu0 %vm776_vm1, %v2914_v1  ;;  %v1330_v16 = vmax.f32 %v1053_v8, 0.0  ;;  %v1202_v6 = vpop.f32.mrf.mxu3 }
 0x17a   : > { %v3374_v4 = vpop.f32.mrf.mxu1 }
 0x17e   : > { %v1054_v12 = vpop.f32.mrf.mxu0 }
 0x17f   : > { %v1055_v13 = vadd.f32 %v3246_v14, %v1054_v12 }
 0x181   : > { %v1331_v17 = vmax.f32 %v1055_v13, 0.0  ;;  %v1744_v13 = vadd.f32 %v3304_v29, %v3374_v4 }
 0x182   : > { %v1746_v18 = vpop.f32.mrf.mxu1 }
 0x183   : > { %v1444_v20 = vpack.c.bf16 %v1331_v17, %v1330_v16  ;;  %v1747_v1 = vadd.f32 %v3304_v29, %v1746_v18  ;;  %v1203_v16 = vadd.f32 %v3246_v14, %v1202_v6  ;;  %v1742_v17 = vadd.f32 %v3304_v29, %v3368_v62  ;;  %v2945_v62 = vld [vmem:[%s3218_s30 + $0x1a8] sm:$0xff] }
 0x184   : > { %2799 = vmatmul.msk.bf16.gmra.mxu3 %vm776_vm1, %v2945_v62 }
 0x185   : > { %2832 = vmatmul.msk.bf16.gmra.mxu1 %vm1514_vm2, %v1444_v20  ;;  %v2048_v10 = vmax.f32 %v1747_v1, 0.0  ;;  %v1204_v20 = vpop.f32.mrf.mxu3  ;;  %v1390_v23 = vmax.f32 %v1203_v16, 0.0 }
 0x186   : > { %v1057_v22 = vpop.f32.mrf.mxu0  ;;  %v1205_v4 = vadd.f32 %v3246_v14, %v1204_v20 }
 0x187   : > { %v1058_v28 = vadd.f32 %v3246_v14, %v1057_v22 }
 0x189   : > { %2769 = vmatmul.msk.bf16.gmra.mxu0 %vm776_vm1, %v2915_v21  ;;  %v1332_v37 = vmax.f32 %v1058_v28, 0.0  ;;  %v2047_v21 = vmax.f32 %v1744_v13, 0.0  ;;  %v1391_v28 = vmax.f32 %v1205_v4, 0.0 }
 0x18a   : > { %v1748_v24 = vpop.f32.mrf.mxu1 }
 0x18b   : > { %v1749_v60 = vadd.f32 %v3304_v29, %v1748_v24  ;;  %v2046_v24 = vmax.f32 %v1742_v17, 0.0 }
 0x18d   : > { %v2049_v7 = vmax.f32 %v1749_v60, 0.0  ;;  %v1207_v40 = vpop.f32.mrf.mxu3 }
 0x18e   : > { %v1059_v32 = vpop.f32.mrf.mxu0  ;;  %v1208_v45 = vadd.f32 %v3246_v14, %v1207_v40 }
 0x18f   : > { %v1060_v35 = vadd.f32 %v3246_v14, %v1059_v32  ;;  %v2172_v15 = vpack.c.bf16 %v2049_v7, %v2048_v10  ;;  %v2171_v32 = vpack.c.bf16 %v2047_v21, %v2046_v24 }
 0x190   : > { %v1392_v50 = vmax.f32 %v1208_v45, 0.0 }
 0x191   : > { %v1333_v38 = vmax.f32 %v1060_v35, 0.0  ;;  %v1474_v35 = vpack.c.bf16 %v1391_v28, %v1390_v23 }
 0x192   : > { %v1751_v39 = vpop.f32.mrf.mxu1 }
 0x193   : > { %v1445_v42 = vpack.c.bf16 %v1333_v38, %v1332_v37  ;;  %v1752_v46 = vadd.f32 %v3304_v29, %v1751_v39  ;;  %2862 = vmatmul.msk.bf16.gmra.mxu2 %vm1514_vm2, %v1474_v35 }
 0x194   : > { %2800 = vmatmul.msk.bf16.gmra.mxu3 %vm776_vm1, %v2946_v56 }
 0x195   : > { %2833 = vmatmul.msk.bf16.gmra.mxu1 %vm1514_vm2, %v1445_v42  ;;  %v2050_v52 = vmax.f32 %v1752_v46, 0.0  ;;  %v1209_v48 = vpop.f32.mrf.mxu3 }
 0x196   : > { %v1062_v44 = vpop.f32.mrf.mxu0  ;;  %v1210_v51 = vadd.f32 %v3246_v14, %v1209_v48 }
 0x197   : > { %v1063_v53 = vadd.f32 %v3246_v14, %v1062_v44 }
 0x198   : > { %v1393_v55 = vmax.f32 %v1210_v51, 0.0 }
 0x199   : > { %2770 = vmatmul.msk.bf16.gmra.mxu0 %vm776_vm1, %v2916_v43  ;;  %v1334_v2 = vmax.f32 %v1063_v53, 0.0  ;;  %v2918_v43 = vld [vmem:[%s3218_s30 + $0xd0] sm:$0xff] }
 0x19a   : > { %v1753_v47 = vpop.f32.mrf.mxu1 }
 0x19b   : > { %v1754_v49 = vadd.f32 %v3304_v29, %v1753_v47 }
 0x19d   : > { %v2051_v54 = vmax.f32 %v1754_v49, 0.0 }
 0x19e   : > { %v1064_v58 = vpop.f32.mrf.mxu0 }
 0x19f   : > { %v1065_v61 = vadd.f32 %v3246_v14, %v1064_v58  ;;  %v2173_v63 = vpack.c.bf16 %v2051_v54, %v2050_v52 }
 0x1a1   : > { %v1335_v3 = vmax.f32 %v1065_v61, 0.0  ;;  %2248 = vmatpush.bf16.xpose.msrb.mxu2 %v2173_v63 }
 0x1a2   : > { %v1756_v5 = vpop.f32.mrf.mxu1 }
 0x1a3   : > { %v1446_v8 = vpack.c.bf16 %v1335_v3, %v1334_v2  ;;  %v1757_v18 = vadd.f32 %v3304_v29, %v1756_v5  ;;  %v1212_v2 = vpop.f32.mrf.mxu3  ;;  %v2919_v5 = vld [vmem:[%s3218_s30 + $0xd8] sm:$0xff] }
 0x1a4   : > { %v1213_v7 = vadd.f32 %v3246_v14, %v1212_v2 }
 0x1a5   : > { %2834 = vmatmul.msk.bf16.gmra.mxu1 %vm1514_vm2, %v1446_v8  ;;  %v2052_v25 = vmax.f32 %v1757_v18, 0.0 }
 0x1a6   : > { %v1067_v12 = vpop.f32.mrf.mxu0 }
 0x1a7   : > { %v1068_v26 = vadd.f32 %v3246_v14, %v1067_v12  ;;  %v1394_v12 = vmax.f32 %v1213_v7, 0.0 }
 0x1a9   : > { %2771 = vmatmul.msk.bf16.gmra.mxu0 %vm776_vm1, %v2917_v11  ;;  %2249 = vmatpush.bf16.xpose.msrb.mxu2 %v2172_v15  ;;  %v1336_v37 = vmax.f32 %v1068_v26, 0.0 }
 0x1aa   : > { %v1758_v19 = vpop.f32.mrf.mxu1 }
 0x1ab   : > { %v1759_v22 = vadd.f32 %v3304_v29, %v1758_v19  ;;  %v2947_v19 = vld [vmem:[%s3218_s30 + $0x1b8] sm:$0xff] }
 0x1ac   : > { %2801 = vmatmul.msk.bf16.gmra.mxu3 %vm776_vm1, %v2947_v19 }
 0x1ad   : > { %v2053_v27 = vmax.f32 %v1759_v22, 0.0 }
 0x1ae   : > { %v1069_v30 = vpop.f32.mrf.mxu0 }
 0x1af   : > { %v1070_v31 = vadd.f32 %v3246_v14, %v1069_v30  ;;  %v3421_v36 = vpack.c.bf16 %v2053_v27, %v2052_v25  ;;  %v2920_v27 = vld [vmem:[%s3218_s30 + $0xe0] sm:$0xff] }
 0x1b1   : > { %v1337_v38 = vmax.f32 %v1070_v31, 0.0  ;;  %2250 = vmatpush.bf16.xpose.msrb.mxu2 %v2171_v32 }
 0x1b2   : > { %v1761_v39 = vpop.f32.mrf.mxu1 }
 0x1b3   : > { %v1447_v42 = vpack.c.bf16 %v1337_v38, %v1336_v37  ;;  %v1762_v46 = vadd.f32 %v3304_v29, %v1761_v39 }
 0x1b5   : > { %2835 = vmatmul.msk.bf16.gmra.mxu1 %vm1514_vm2, %v1447_v42  ;;  %v2054_v52 = vmax.f32 %v1762_v46, 0.0 }
 0x1b6   : > { %v1072_v44 = vpop.f32.mrf.mxu0 }
 0x1b7   : > { %v1073_v53 = vadd.f32 %v3246_v14, %v1072_v44 }
 0x1b9   : > { %2772 = vmatmul.msk.bf16.gmra.mxu0 %vm776_vm1, %v2918_v43  ;;  %2251 = vmatpush.bf16.xpose.msrb.mxu2 %v3365_v59  ;;  %v1475_v59 = vpack.c.bf16 %v1393_v55, %v1392_v50  ;;  %v1338_v63 = vmax.f32 %v1073_v53, 0.0  ;;  %v2948_v43 = vld [vmem:[%s3218_s30 + $0x1c0] sm:$0xff] }
 0x1ba   : > { %v1763_v47 = vpop.f32.mrf.mxu1 }
 0x1bb   : > { %v1764_v49 = vadd.f32 %v3304_v29, %v1763_v47  ;;  %2863 = vmatmul.msk.bf16.gmra.mxu2 %vm1514_vm2, %v1475_v59 }
 0x1bc   : > { %2802 = vmatmul.msk.bf16.gmra.mxu3 %vm776_vm1, %v2948_v43 }
 0x1bd   : > { %v2055_v54 = vmax.f32 %v1764_v49, 0.0 }
 0x1be   : > { %v1074_v58 = vpop.f32.mrf.mxu0 }
 0x1bf   : > { %v1075_v60 = vadd.f32 %v3246_v14, %v1074_v58  ;;  %v3436_v61 = vpack.c.bf16 %v2055_v54, %v2054_v52  ;;  %v2921_v52 = vld [vmem:[%s3218_s30 + $0xe8] sm:$0xff] }
 0x1c1   : > { %v1339_v0 = vmax.f32 %v1075_v60, 0.0  ;;  %2252 = vmatpush.bf16.xpose.msrb.mxu2 %v3352_v34  ;;  %v1214_v34 = vpop.f32.mrf.mxu3 }
 0x1c2   : > { %v1766_v1 = vpop.f32.mrf.mxu1  ;;  %v1215_v13 = vadd.f32 %v3246_v14, %v1214_v34 }
 0x1c3   : > { %v1448_v3 = vpack.c.bf16 %v1339_v0, %v1338_v63  ;;  %v1767_v8 = vadd.f32 %v3304_v29, %v1766_v1 }
 0x1c4   : > { %v1395_v18 = vmax.f32 %v1215_v13, 0.0 }
 0x1c5   : > { %2836 = vmatmul.msk.bf16.gmra.mxu1 %vm1514_vm2, %v1448_v3  ;;  %v2056_v15 = vmax.f32 %v1767_v8, 0.0 }
 0x1c6   : > { %v1077_v6 = vpop.f32.mrf.mxu0 }
 0x1c7   : > { %v1078_v16 = vadd.f32 %v3246_v14, %v1077_v6 }
 0x1c9   : > { %2773 = vmatmul.msk.bf16.gmra.mxu0 %vm776_vm1, %v2919_v5  ;;  %2253 = vmatpush.bf16.xpose.msrb.mxu2 %v3337_v9  ;;  %v1476_v9 = vpack.c.bf16 %v1395_v18, %v1394_v12  ;;  %v1340_v23 = vmax.f32 %v1078_v16, 0.0  ;;  %v1217_v25 = vpop.f32.mrf.mxu3  ;;  %v2949_v5 = vld [vmem:[%s3218_s30 + $0x1c8] sm:$0xff]  ;;  %v3487_v16 = vpop.f32.mrf.mxu2 }
 0x1ca   : > { %v1768_v10 = vpop.f32.mrf.mxu1  ;;  %v1218_v62 = vadd.f32 %v3246_v14, %v1217_v25 }
 0x1cb   : > { %v1769_v11 = vadd.f32 %v3304_v29, %v1768_v10  ;;  %2864 = vmatmul.msk.bf16.gmra.mxu2 %vm1514_vm2, %v1476_v9 }
 0x1cc   : > { %v1396_v35 = vmax.f32 %v1218_v62, 0.0  ;;  %2803 = vmatmul.msk.bf16.gmra.mxu3 %vm776_vm1, %v2949_v5 }
 0x1cd   : > { %v2057_v17 = vmax.f32 %v1769_v11, 0.0 }
 0x1ce   : > { %v1079_v20 = vpop.f32.mrf.mxu0 }
 0x1cf   : > { %v1080_v21 = vadd.f32 %v3246_v14, %v1079_v20  ;;  %v3452_v22 = vpack.c.bf16 %v2057_v17, %v2056_v15  ;;  %v2922_v17 = vld [vmem:[%s3218_s30 + $0xf0] sm:$0xff] }
 0x1d1   : > { %v1341_v4 = vmax.f32 %v1080_v21, 0.0  ;;  %2254 = vmatpush.bf16.xpose.msrb.mxu2 %v3326_v57  ;;  %v1219_v57 = vpop.f32.mrf.mxu3 }
 0x1d2   : > { %v1771_v24 = vpop.f32.mrf.mxu1  ;;  %v1220_v37 = vadd.f32 %v3246_v14, %v1219_v57 }
 0x1d3   : > { %v1449_v26 = vpack.c.bf16 %v1341_v4, %v1340_v23  ;;  %v1772_v30 = vadd.f32 %v3304_v29, %v1771_v24  ;;  %v3496_v4 = vpop.f32.mrf.mxu2 }
 0x1d4   : > { %v1397_v42 = vmax.f32 %v1220_v37, 0.0 }
 0x1d5   : > { %2837 = vmatmul.msk.bf16.gmra.mxu1 %vm1514_vm2, %v1449_v26  ;;  %v2058_v38 = vmax.f32 %v1772_v30, 0.0  ;;  %v2950_v26 = vld [vmem:[%s3218_s30 + $0x1d0] sm:$0xff] }
 0x1d6   : > { %v1082_v28 = vpop.f32.mrf.mxu0 }
 0x1d7   : > { %v1083_v39 = vadd.f32 %v3246_v14, %v1082_v28 }
 0x1d9   : > { %2774 = vmatmul.msk.bf16.gmra.mxu0 %vm776_vm1, %v2920_v27  ;;  %2255 = vmatpush.bf16.xpose.msrb.mxu2 %v3315_v41  ;;  %v1477_v41 = vpack.c.bf16 %v1397_v42, %v1396_v35  ;;  %v1342_v47 = vmax.f32 %v1083_v39, 0.0  ;;  %v1222_v50 = vpop.f32.mrf.mxu3 }
 0x1da   : > { %v1773_v31 = vpop.f32.mrf.mxu1  ;;  %v1223_v54 = vadd.f32 %v3246_v14, %v1222_v50 }
 0x1db   : > { %v1774_v32 = vadd.f32 %v3304_v29, %v1773_v31  ;;  %2865 = vmatmul.msk.bf16.gmra.mxu2 %vm1514_vm2, %v1477_v41  ;;  %v3503_v37 = vpop.f32.mrf.mxu2 }
 0x1dc   : > { %v1398_v59 = vmax.f32 %v1223_v54, 0.0  ;;  %2804 = vmatmul.msk.bf16.gmra.mxu3 %vm776_vm1, %v2950_v26 }
 0x1dd   : > { %v2059_v40 = vmax.f32 %v1774_v32, 0.0 }
 0x1de   : > { %v1084_v44 = vpop.f32.mrf.mxu0 }
 0x1df   : > { %v1085_v45 = vadd.f32 %v3246_v14, %v1084_v44  ;;  %v3468_v46 = vpack.c.bf16 %v2059_v40, %v2058_v38  ;;  %v2923_v38 = vld [vmem:[%s3218_s30 + $0xf8] sm:$0xff] }
 0x1e1   : > { %v1343_v48 = vmax.f32 %v1085_v45, 0.0  ;;  %v1224_v58 = vpop.f32.mrf.mxu3 }
 0x1e2   : > { %v1776_v49 = vpop.f32.mrf.mxu1  ;;  %v1225_v63 = vadd.f32 %v3246_v14, %v1224_v58 }
 0x1e3   : > { %v1450_v51 = vpack.c.bf16 %v1343_v48, %v1342_v47  ;;  %v1777_v55 = vadd.f32 %v3304_v29, %v1776_v49  ;;  %v3510_v41 = vpop.f32.mrf.mxu2  ;;  %v2951_v49 = vld [vmem:[%s3218_s30 + $0x1d8] sm:$0xff] }
 0x1e4   : > { %v1399_v3 = vmax.f32 %v1225_v63, 0.0 }
 0x1e5   : > { %2838 = vmatmul.msk.bf16.gmra.mxu1 %vm1514_vm2, %v1450_v51  ;;  %v2060_v0 = vmax.f32 %v1777_v55, 0.0 }
 0x1e6   : > { %v1087_v53 = vpop.f32.mrf.mxu0  ;;  %v1478_v8 = vpack.c.bf16 %v1399_v3, %v1398_v59  ;;  %v2924_v59 = vld [vmem:[%s3218_s30 + $0x100] sm:$0xff] }
 0x1e7   : > { %v1088_v1 = vadd.f32 %v3246_v14, %v1087_v53 }
 0x1e9   : > { %2775 = vmatmul.msk.bf16.gmra.mxu0 %vm776_vm1, %v2921_v52  ;;  %v1344_v34 = vmax.f32 %v1088_v1, 0.0  ;;  %v1227_v13 = vpop.f32.mrf.mxu3 }
 0x1ea   : > { %v1778_v56 = vpop.f32.mrf.mxu1  ;;  %v1228_v19 = vadd.f32 %v3246_v14, %v1227_v13 }
 0x1eb   : > { %v1779_v60 = vadd.f32 %v3304_v29, %v1778_v56  ;;  %2866 = vmatmul.msk.bf16.gmra.mxu2 %vm1514_vm2, %v1478_v8 }
 0x1ec   : > { %v1400_v9 = vmax.f32 %v1228_v19, 0.0  ;;  %2805 = vmatmul.msk.bf16.gmra.mxu3 %vm776_vm1, %v2951_v49 }
 0x1ed   : > { %v2061_v2 = vmax.f32 %v1779_v60, 0.0  ;;  %v3517_v60 = vpop.f32.mrf.mxu2 }
 0x1ee   : > { %v1089_v6 = vpop.f32.mrf.mxu0 }
 0x1ef   : > { %v1090_v7 = vadd.f32 %v3246_v14, %v1089_v6  ;;  %v3482_v10 = vpack.c.bf16 %v2061_v2, %v2060_v0 }
 0x1f1   : > { %v1345_v11 = vmax.f32 %v1090_v7, 0.0  ;;  %v1229_v21 = vpop.f32.mrf.mxu3 }
 0x1f2   : > { %v3484_v12 = vpop.f32.mrf.mxu1  ;;  %v1230_v23 = vadd.f32 %v3246_v14, %v1229_v21 }
 0x1f3   : > { %v1451_v15 = vpack.c.bf16 %v1345_v11, %v1344_v34 }
 0x1f4   : > { %v1401_v25 = vmax.f32 %v1230_v23, 0.0 }
 0x1f5   : > { %2839 = vmatmul.msk.bf16.gmra.mxu1 %vm1514_vm2, %v1451_v15  ;;  %v3526_v8 = vpop.f32.mrf.mxu2 }
 0x1f6   : > { %v1092_v18 = vpop.f32.mrf.mxu0  ;;  %v1479_v62 = vpack.c.bf16 %v1401_v25, %v1400_v9 }
 0x1f7   : > { %v1093_v24 = vadd.f32 %v3246_v14, %v1092_v18 }
 0x1f9   : > { %2776 = vmatmul.msk.bf16.gmra.mxu0 %vm776_vm1, %v2922_v17  ;;  %v1346_v30 = vmax.f32 %v1093_v24, 0.0  ;;  %v1232_v32 = vpop.f32.mrf.mxu3  ;;  %v2952_v17 = vld [vmem:[%s3218_s30 + $0x1e0] sm:$0xff] }
 0x1fa   : > { %v3493_v20 = vpop.f32.mrf.mxu1  ;;  %v1233_v40 = vadd.f32 %v3246_v14, %v1232_v32  ;;  %v2925_v32 = vld [vmem:[%s3218_s30 + $0x108] sm:$0xff] }
 0x1fb   : > { %2867 = vmatmul.msk.bf16.gmra.mxu2 %vm1514_vm2, %v1479_v62 }
 0x1fc   : > { %v1402_v44 = vmax.f32 %v1233_v40, 0.0  ;;  %2806 = vmatmul.msk.bf16.gmra.mxu3 %vm776_vm1, %v2952_v17 }
 0x1fe   : > { %v1094_v27 = vpop.f32.mrf.mxu0 }
 0x1ff   : > { %v1095_v28 = vadd.f32 %v3246_v14, %v1094_v27 }
 0x201   : > { %v1347_v31 = vmax.f32 %v1095_v28, 0.0  ;;  %v1234_v43 = vpop.f32.mrf.mxu3 }
 0x202   : > { %v1786_v57 = vpop.f32.mrf.mxu1  ;;  %v1235_v45 = vadd.f32 %v3246_v14, %v1234_v43 }
 0x203   : > { %v1452_v35 = vpack.c.bf16 %v1347_v31, %v1346_v30  ;;  %v1787_v24 = vadd.f32 %v3304_v29, %v1786_v57 }
 0x204   : > { %v1403_v48 = vmax.f32 %v1235_v45, 0.0 }
 0x205   : > { %2840 = vmatmul.msk.bf16.gmra.mxu1 %vm1514_vm2, %v1452_v35  ;;  %v2064_v31 = vmax.f32 %v1787_v24, 0.0 }
 0x206   : > { %v1097_v39 = vpop.f32.mrf.mxu0  ;;  %v1480_v52 = vpack.c.bf16 %v1403_v48, %v1402_v44 }
 0x207   : > { %v1098_v47 = vadd.f32 %v3246_v14, %v1097_v39  ;;  %v3544_v39 = vld [vmem:[%s4005_s3] ss:$0 sm:$0xff] }
 0x209   : > { %2777 = vmatmul.msk.bf16.gmra.mxu0 %vm776_vm1, %v2923_v38  ;;  %v1348_v53 = vmax.f32 %v1098_v47, 0.0  ;;  %v1237_v56 = vpop.f32.mrf.mxu3  ;;  %v1784_v38 = vadd.f32 %v3304_v29, %v3493_v20 }
 0x20a   : > { %v1788_v42 = vpop.f32.mrf.mxu1  ;;  %v1238_v0 = vadd.f32 %v3246_v14, %v1237_v56 }
 0x20b   : > { %2868 = vmatmul.msk.bf16.gmra.mxu2 %vm1514_vm2, %v1480_v52  ;;  %v1789_v19 = vadd.f32 %v3304_v29, %v1788_v42  ;;  %v1782_v42 = vadd.f32 %v3304_v29, %v3484_v12  ;;  %v2063_v20 = vmax.f32 %v1784_v38, 0.0 }
 0x20c   : > { %v1404_v6 = vmax.f32 %v1238_v0, 0.0 }
 0x20d   : > { %v2065_v62 = vmax.f32 %v1789_v19, 0.0 }
 0x20e   : > { %v1099_v50 = vpop.f32.mrf.mxu0 }
 0x20f   : > { %v1100_v51 = vadd.f32 %v3246_v14, %v1099_v50  ;;  %v2180_v57 = vpack.c.bf16 %v2065_v62, %v2064_v31  ;;  %v2062_v50 = vmax.f32 %v1782_v42, 0.0  ;;  %v2954_v31 = vld [vmem:[%s3218_s30 + $0x1f0] sm:$0xff] }
 0x211   : > { %v1349_v54 = vmax.f32 %v1100_v51, 0.0  ;;  %v1239_v3 = vpop.f32.mrf.mxu3 }
 0x212   : > { %v1791_v55 = vpop.f32.mrf.mxu1  ;;  %v1240_v7 = vadd.f32 %v3246_v14, %v1239_v3 }
 0x213   : > { %v1453_v58 = vpack.c.bf16 %v1349_v54, %v1348_v53  ;;  %v1792_v1 = vadd.f32 %v3304_v29, %v1791_v55  ;;  %v2953_v55 = vld [vmem:[%s3218_s30 + $0x1e8] sm:$0xff] }
 0x214   : > { %v1405_v15 = vmax.f32 %v1240_v7, 0.0  ;;  %2807 = vmatmul.msk.bf16.gmra.mxu3 %vm776_vm1, %v2953_v55 }
 0x215   : > { %2841 = vmatmul.msk.bf16.gmra.mxu1 %vm1514_vm2, %v1453_v58  ;;  %v2066_v34 = vmax.f32 %v1792_v1, 0.0  ;;  %v1917_v1 = vadd.f32 %v3304_v29, %v3487_v16 }
 0x216   : > { %v1102_v63 = vpop.f32.mrf.mxu0  ;;  %v1481_v23 = vpack.c.bf16 %v1405_v15, %v1404_v6  ;;  %v2926_v15 = vld [vmem:[%s3218_s30 + $0x110] sm:$0xff] }
 0x217   : > { %v1103_v11 = vadd.f32 %v3246_v14, %v1102_v63 }
 0x219   : > { %2778 = vmatmul.msk.bf16.gmra.mxu0 %vm776_vm1, %v2924_v59  ;;  %v1350_v25 = vmax.f32 %v1103_v11, 0.0  ;;  %v1242_v28 = vpop.f32.mrf.mxu3  ;;  %v2179_v59 = vpack.c.bf16 %v2063_v20, %v2062_v50  ;;  %v2116_v11 = vmax.f32 %v1917_v1, 0.0 }
 0x21a   : > { %v1793_v2 = vpop.f32.mrf.mxu1  ;;  %v1243_v40 = vadd.f32 %v3544_v39, %v1242_v28 }
 0x21b   : > { %v1794_v5 = vadd.f32 %v3304_v29, %v1793_v2  ;;  %2869 = vmatmul.msk.bf16.gmra.mxu2 %vm1514_vm2, %v1481_v23  ;;  %v1919_v2 = vadd.f32 %v3304_v29, %v3496_v4 }
 0x21c   : > { %v1406_v48 = vmax.f32 %v1243_v40, 0.0  ;;  %v1924_v40 = vadd.f32 %v3304_v29, %v3510_v41 }
 0x21d   : > { %v2067_v13 = vmax.f32 %v1794_v5, 0.0 }
 0x21e   : > { %v1104_v18 = vpop.f32.mrf.mxu0 }
 0x21f   : > { %v1105_v21 = vadd.f32 %v3246_v14, %v1104_v18  ;;  %v2181_v9 = vpack.c.bf16 %v2067_v13, %v2066_v34  ;;  %v3537_v14 = vpop.f32.mrf.mxu2  ;;  %v2117_v13 = vmax.f32 %v1919_v2, 0.0 }
 0x221   : > { %v1351_v26 = vmax.f32 %v1105_v21, 0.0  ;;  %2262 = vmatpush.bf16.xpose.msrb.mxu3 %v2181_v9  ;;  %v1244_v45 = vpop.f32.mrf.mxu3  ;;  %v3571_v4 = vpack.c.bf16 %v2117_v13, %v2116_v11 }
 0x222   : > { %v1796_v27 = vpop.f32.mrf.mxu1  ;;  %v1245_v49 = vadd.f32 %v3544_v39, %v1244_v45 }
 0x223   : > { %v1454_v30 = vpack.c.bf16 %v1351_v26, %v1350_v25  ;;  %v1797_v43 = vadd.f32 %v3304_v29, %v1796_v27 }
 0x224   : > { %v1407_v12 = vmax.f32 %v1245_v49, 0.0  ;;  %2808 = vmatmul.msk.bf16.gmra.mxu3 %vm776_vm1, %v2954_v31  ;;  %v2927_v49 = vld [vmem:[%s3218_s30 + $0x118] sm:$0xff] }
 0x225   : > { %2842 = vmatmul.msk.bf16.gmra.mxu1 %vm1514_vm2, %v1454_v30  ;;  %v2068_v51 = vmax.f32 %v1797_v43, 0.0 }
 0x226   : > { %v1107_v35 = vpop.f32.mrf.mxu0  ;;  %v1482_v63 = vpack.c.bf16 %v1407_v12, %v1406_v48  ;;  %v2119_v48 = vmax.f32 %v1924_v40, 0.0 }
 0x227   : > { %v1108_v52 = vadd.f32 %v3544_v39, %v1107_v35  ;;  %v3554_v54 = vpop.f32.mrf.mxu2 }
 0x229   : > { %2779 = vmatmul.msk.bf16.gmra.mxu0 %vm776_vm1, %v2925_v32  ;;  %2263 = vmatpush.bf16.xpose.msrb.mxu3 %v2180_v57  ;;  %v1352_v3 = vmax.f32 %v1108_v52, 0.0  ;;  %v1247_v7 = vpop.f32.mrf.mxu3  ;;  %v1922_v57 = vadd.f32 %v3304_v29, %v3503_v37 }
 0x22a   : > { %v1798_v44 = vpop.f32.mrf.mxu1  ;;  %v1248_v16 = vadd.f32 %v3544_v39, %v1247_v7 }
 0x22b   : > { %v1799_v47 = vadd.f32 %v3304_v29, %v1798_v44  ;;  %2870 = vmatmul.msk.bf16.gmra.mxu2 %vm1514_vm2, %v1482_v63 }
 0x22c   : > { %v1408_v24 = vmax.f32 %v1248_v16, 0.0 }
 0x22d   : > { %v2069_v53 = vmax.f32 %v1799_v47, 0.0  ;;  %v2118_v47 = vmax.f32 %v1922_v57, 0.0 }
 0x22e   : > { %v1109_v56 = vpop.f32.mrf.mxu0 }
 0x22f   : > { %v1110_v58 = vadd.f32 %v3544_v39, %v1109_v56  ;;  %v3559_v0 = vpack.c.bf16 %v2069_v53, %v2068_v51  ;;  %v3568_v17 = vpop.f32.mrf.mxu2  ;;  %v3597_v51 = vpack.c.bf16 %v2119_v48, %v2118_v47 }
 0x231   : > { %v1353_v5 = vmax.f32 %v1110_v58, 0.0  ;;  %2264 = vmatpush.bf16.xpose.msrb.mxu3 %v2179_v59  ;;  %v1249_v9 = vpop.f32.mrf.mxu3 }
 0x232   : > { %v1801_v6 = vpop.f32.mrf.mxu1  ;;  %v1250_v25 = vadd.f32 %v3544_v39, %v1249_v9 }
 0x233   : > { %v1455_v34 = vpack.c.bf16 %v1353_v5, %v1352_v3  ;;  %v1802_v19 = vadd.f32 %v3304_v29, %v1801_v6  ;;  %v2955_v3 = vld [vmem:[%s3218_s30 + $0x1f8] sm:$0xff] }
 0x234   : > { %v1409_v62 = vmax.f32 %v1250_v25, 0.0  ;;  %2809 = vmatmul.msk.bf16.gmra.mxu3 %vm776_vm1, %v2955_v3 }
 0x235   : > { %2843 = vmatmul.msk.bf16.gmra.mxu1 %vm1514_vm2, %v1455_v34  ;;  %v2070_v26 = vmax.f32 %v1802_v19, 0.0 }
 0x236   : > { %v1112_v18 = vpop.f32.mrf.mxu0 }
 0x237   : > { %v1113_v27 = vadd.f32 %v3544_v39, %v1112_v18  ;;  %v3579_v30 = vpop.f32.mrf.mxu2 }
 0x239   : > { %2780 = vmatmul.msk.bf16.gmra.mxu0 %vm776_vm1, %v2926_v15  ;;  %2265 = vmatpush.bf16.xpose.msrb.mxu3 %v3482_v10  ;;  %v1483_v10 = vpack.c.bf16 %v1409_v62, %v1408_v24  ;;  %v1354_v42 = vmax.f32 %v1113_v27, 0.0  ;;  %v1252_v45 = vpop.f32.mrf.mxu3 }
 0x23a   : > { %v1803_v21 = vpop.f32.mrf.mxu1  ;;  %v1253_v41 = vadd.f32 %v3544_v39, %v1252_v45 }
 0x23b   : > { %v1804_v23 = vadd.f32 %v3304_v29, %v1803_v21  ;;  %2871 = vmatmul.msk.bf16.gmra.mxu2 %vm1514_vm2, %v1483_v10 }
 0x23c   : > { %v1410_v55 = vmax.f32 %v1253_v41, 0.0 }
 0x23d   : > { %v2071_v28 = vmax.f32 %v1804_v23, 0.0  ;;  %v2928_v23 = vld [vmem:[%s3218_s30 + $0x120] sm:$0xff] }
 0x23e   : > { %v1114_v32 = vpop.f32.mrf.mxu0 }
 0x23f   : > { %v1115_v35 = vadd.f32 %v3544_v39, %v1114_v32  ;;  %v3584_v38 = vpack.c.bf16 %v2071_v28, %v2070_v26  ;;  %v3594_v50 = vpop.f32.mrf.mxu2 }
 0x241   : > { %v1355_v43 = vmax.f32 %v1115_v35, 0.0  ;;  %2266 = vmatpush.bf16.xpose.msrb.mxu3 %v3468_v46  ;;  %v1254_v53 = vpop.f32.mrf.mxu3 }
 0x242   : > { %v1806_v44 = vpop.f32.mrf.mxu1  ;;  %v1255_v56 = vadd.f32 %v3544_v39, %v1254_v53  ;;  %v2929_v53 = vld [vmem:[%s3218_s30 + $0x128] sm:$0xff] }
 0x243   : > { %v1456_v20 = vpack.c.bf16 %v1355_v43, %v1354_v42  ;;  %v1807_v46 = vadd.f32 %v3304_v29, %v1806_v44 }
 0x244   : > { %v1411_v1 = vmax.f32 %v1255_v56, 0.0 }
 0x245   : > { %2844 = vmatmul.msk.bf16.gmra.mxu1 %vm1514_vm2, %v1456_v20  ;;  %v2072_v58 = vmax.f32 %v1807_v46, 0.0 }
 0x246   : > { %v1117_v37 = vpop.f32.mrf.mxu0 }
 0x247   : > { %v1118_v59 = vadd.f32 %v3544_v39, %v1117_v37  ;;  %v3605_v2 = vpop.f32.mrf.mxu2 }
 0x249   : > { %2781 = vmatmul.msk.bf16.gmra.mxu0 %vm776_vm1, %v2927_v49  ;;  %2267 = vmatpush.bf16.xpose.msrb.mxu3 %v3452_v22  ;;  %v1484_v22 = vpack.c.bf16 %v1411_v1, %v1410_v55  ;;  %v1356_v13 = vmax.f32 %v1118_v59, 0.0  ;;  %v1257_v16 = vpop.f32.mrf.mxu3 }
 0x24a   : > { %v1808_v52 = vpop.f32.mrf.mxu1  ;;  %v1258_v25 = vadd.f32 %v3544_v39, %v1257_v16 }
 0x24b   : > { %v1809_v12 = vadd.f32 %v3304_v29, %v1808_v52  ;;  %v3613_v29 = vld [vmem:[%s3213_s21] ss:$0 sm:$0xff]  ;;  %2872 = vmatmul.msk.bf16.gmra.mxu2 %vm1514_vm2, %v1484_v22 }
 0x24c   : > { %v1927_v34 = vadd.f32 %v3613_v29, %v3517_v60  ;;  %v1929_v11 = vadd.f32 %v3613_v29, %v3526_v8  ;;  %v1412_v62 = vmax.f32 %v1258_v25, 0.0  ;;  %v1932_v45 = vadd.f32 %v3613_v29, %v3537_v14 }
 0x24d   : > { %v2073_v63 = vmax.f32 %v1809_v12, 0.0  ;;  %v1934_v20 = vadd.f32 %v3613_v29, %v3554_v54 }
 0x24e   : > { %v1119_v5 = vpop.f32.mrf.mxu0  ;;  %v2120_v21 = vmax.f32 %v1927_v34, 0.0  ;;  %v2121_v9 = vmax.f32 %v1929_v11, 0.0  ;;  %v2122_v46 = vmax.f32 %v1932_v45, 0.0 }
 0x24f   : > { %v1120_v6 = vadd.f32 %v3544_v39, %v1119_v5  ;;  %v3610_v7 = vpack.c.bf16 %v2073_v63, %v2072_v58  ;;  %v3623_v24 = vpop.f32.mrf.mxu2  ;;  %v2123_v52 = vmax.f32 %v1934_v20, 0.0 }
 0x250   : > { %v3626_v8 = vpack.c.bf16 %v2121_v9, %v2120_v21 }
 0x251   : > { %v1357_v15 = vmax.f32 %v1120_v6, 0.0  ;;  %2268 = vmatpush.bf16.xpose.msrb.mxu3 %v3436_v61  ;;  %v1259_v27 = vpop.f32.mrf.mxu3  ;;  %v3647_v14 = vpack.c.bf16 %v2123_v52, %v2122_v46  ;;  %v1942_v52 = vadd.f32 %v3613_v29, %v3594_v50 }
 0x252   : > { %v1811_v18 = vpop.f32.mrf.mxu1  ;;  %v1260_v31 = vadd.f32 %v3544_v39, %v1259_v27 }
 0x253   : > { %v1457_v19 = vpack.c.bf16 %v1357_v15, %v1356_v13  ;;  %v1812_v26 = vadd.f32 %v3613_v29, %v1811_v18 }
 0x254   : > { %v1413_v57 = vmax.f32 %v1260_v31, 0.0 }
 0x255   : > { %2845 = vmatmul.msk.bf16.gmra.mxu1 %vm1514_vm2, %v1457_v19  ;;  %v2074_v32 = vmax.f32 %v1812_v26, 0.0 }
 0x256   : > { %v1122_v60 = vpop.f32.mrf.mxu0  ;;  %v1485_v44 = vpack.c.bf16 %v1413_v57, %v1412_v62 }
 0x257   : > { %v1123_v35 = vadd.f32 %v3544_v39, %v1122_v60  ;;  %v3634_v40 = vpop.f32.mrf.mxu2  ;;  %v1939_v60 = vadd.f32 %v3613_v29, %v3579_v30 }
 0x259   : > { %2782 = vmatmul.msk.bf16.gmra.mxu0 %vm776_vm1, %v2928_v23  ;;  %2269 = vmatpush.bf16.xpose.msrb.mxu3 %v3421_v36  ;;  %v1358_v47 = vmax.f32 %v1123_v35, 0.0  ;;  %v1262_v37 = vpop.f32.mrf.mxu3  ;;  %v1937_v23 = vadd.f32 %v3613_v29, %v3568_v17  ;;  %v2125_v35 = vmax.f32 %v1939_v60, 0.0 }
 0x25a   : > { %v1813_v61 = vpop.f32.mrf.mxu1  ;;  %v1263_v56 = vadd.f32 %v3544_v39, %v1262_v37 }
 0x25b   : > { %v1814_v28 = vadd.f32 %v3613_v29, %v1813_v61  ;;  %2873 = vmatmul.msk.bf16.gmra.mxu2 %vm1514_vm2, %v1485_v44 }
 0x25c   : > { %v1414_v3 = vmax.f32 %v1263_v56, 0.0 }
 0x25d   : > { %v2075_v10 = vmax.f32 %v1814_v28, 0.0 }
 0x25e   : > { %v1124_v42 = vpop.f32.mrf.mxu0 }
 0x25f   : > { %v1125_v43 = vadd.f32 %v3544_v39, %v1124_v42  ;;  %v3637_v36 = vpack.c.bf16 %v2075_v10, %v2074_v32  ;;  %v1951_v12 = vpop.f32.mrf.mxu2  ;;  %v2124_v32 = vmax.f32 %v1937_v23, 0.0  ;;  %v2930_v10 = vld [vmem:[%s3218_s30 + $0x130] sm:$0xff]  ;;  %v1949_v23 = vadd.f32 %v3613_v29, %v3634_v40  ;;  %s3041_s30 = sshra.s32 %s2394_s22, 4  ;;  %s3042_s30 = int_to_ptr.hbm [resolvable:$true] %s3041_s30 }
 0x260   : > { %v1952_v59 = vadd.f32 %v3613_v29, %v1951_v12  ;;  %s3043_s27 = scalar_lea.hbm %s3042_s30, 128  ;;  %p3048_p1 = scmp.lt.s32.totalorder %s3042_s30, %s4009_s7 }
 0x261   : > { %v1359_v48 = vmax.f32 %v1125_v43, 0.0  ;;  %v1264_v63 = vpop.f32.mrf.mxu3  ;;  %v3673_v42 = vpack.c.bf16 %v2125_v35, %v2124_v32  ;;  %v2129_v32 = vmax.f32 %v1949_v23, 0.0  ;;  %p3044_p12 = scmp.ne.s32.totalorder %s3042_s30, %s3043_s27 }
 0x262   : > { %v1816_v49 = vpop.f32.mrf.mxu1  ;;  %v1265_v5 = vadd.f32 %v3544_v39, %v1264_v63  ;;  %v2130_v18 = vmax.f32 %v1952_v59, 0.0  ;;  %v2126_v59 = vmax.f32 %v1942_v52, 0.0 }
 0x263   : > { %v1458_v41 = vpack.c.bf16 %v1359_v48, %v1358_v47  ;;  %v1817_v54 = vadd.f32 %v3613_v29, %v1816_v49  ;;  %p3045_p13 = pnand %p3044_p12, %p3190_p4 }
 0x264   : > { %v1415_v11 = vmax.f32 %v1265_v5, 0.0 }
 0x265   : > { %2846 = vmatmul.msk.bf16.gmra.mxu1 %vm1514_vm2, %v1458_v41  ;;  %v2076_v6 = vmax.f32 %v1817_v54, 0.0  ;;  %p3046_p0 = pneg %p3045_p13 }
 0x266   : > { %v1127_v55 = vpop.f32.mrf.mxu0  ;;  %v1486_v21 = vpack.c.bf16 %v1415_v11, %v1414_v3 }
 0x267   : > { %v1128_v22 = vadd.f32 %v3544_v39, %v1127_v55  ;;  %v1953_v13 = vpop.f32.mrf.mxu2 }
 0x268   : > { %v1954_v16 = vadd.f32 %v3613_v29, %v1953_v13 }
 0x269   : > { %2783 = vmatmul.msk.bf16.gmra.mxu0 %vm776_vm1, %v2929_v53  ;;  %v1360_v26 = vmax.f32 %v1128_v22, 0.0  ;;  %v1267_v62 = vpop.f32.mrf.mxu3  ;;  %v1944_v53 = vadd.f32 %v3613_v29, %v3605_v2 }
 0x26a   : > { %v1818_v58 = vpop.f32.mrf.mxu1  ;;  %v2131_v25 = vmax.f32 %v1954_v16, 0.0  ;;  %v1268_v30 = vadd.f32 %v3544_v39, %v1267_v62 }
 0x26b   : > { %v1819_v1 = vadd.f32 %v3613_v29, %v1818_v58  ;;  %2874 = vmatmul.msk.bf16.gmra.mxu2 %vm1514_vm2, %v1486_v21  ;;  %v2127_v63 = vmax.f32 %v1944_v53, 0.0  ;;  %v1947_v21 = vadd.f32 %v3613_v29, %v3623_v24 }
 0x26c   : > { %v3665_v28 = vpack.c.bf16 %v2131_v25, %v2130_v18  ;;  %v1416_v45 = vmax.f32 %v1268_v30, 0.0 }
 0x26d   : > { %v2077_v34 = vmax.f32 %v1819_v1, 0.0  ;;  %v3692_v50 = vpack.c.bf16 %v2127_v63, %v2126_v59 }
 0x26e   : > { %v1129_v15 = vpop.f32.mrf.mxu0 }
 0x26f   : > { %v1130_v19 = vadd.f32 %v3544_v39, %v1129_v15  ;;  %v3657_v9 = vpack.c.bf16 %v2077_v34, %v2076_v6  ;;  %v3670_v17 = vpop.f32.mrf.mxu2 }
 0x271   : > { %v1361_v61 = vmax.f32 %v1130_v19, 0.0  ;;  %v1269_v44 = vpop.f32.mrf.mxu3 }
 0x272   : > { %v3663_v27 = vpop.f32.mrf.mxu1  ;;  %v1270_v20 = vadd.f32 %v3544_v39, %v1269_v44 }
 0x273   : > { %v1459_v31 = vpack.c.bf16 %v1361_v61, %v1360_v26 }
 0x274   : > { %v1417_v48 = vmax.f32 %v1270_v20, 0.0 }
 0x275   : > { %2847 = vmatmul.msk.bf16.gmra.mxu1 %vm1514_vm2, %v1459_v31  ;;  %v2128_v31 = vmax.f32 %v1947_v21, 0.0 }
 0x276   : > { %v1132_v57 = vpop.f32.mrf.mxu0  ;;  %v1487_v46 = vpack.c.bf16 %v1417_v48, %v1416_v45 }
 0x277   : > { %v1133_v47 = vadd.f32 %v3544_v39, %v1132_v57  ;;  %v3680_v49 = vpop.f32.mrf.mxu2  ;;  %v3708_v24 = vpack.c.bf16 %v2129_v32, %v2128_v31 }
 0x279   : > { %2784 = vmatmul.msk.bf16.gmra.mxu0 %vm776_vm1, %v2930_v10  ;;  %v1362_v12 = vmax.f32 %v1133_v47, 0.0  ;;  %v1272_v54 = vpop.f32.mrf.mxu3 }
 0x27a   : > { %v3676_v43 = vpop.f32.mrf.mxu1  ;;  %v1273_v5 = vadd.f32 %v3544_v39, %v1272_v54 }
 0x27b   : > { %2875 = vmatmul.msk.bf16.gmra.mxu2 %vm1514_vm2, %v1487_v46 }
 0x27c   : > { %v1418_v22 = vmax.f32 %v1273_v5, 0.0 }
 0x27e   : > { %v1134_v37 = vpop.f32.mrf.mxu0 }
 0x27f   : > { %v1135_v41 = vadd.f32 %v3544_v39, %v1134_v37  ;;  %v3689_v1 = vpop.f32.mrf.mxu2 }
 0x281   : > { %v1363_v55 = vmax.f32 %v1135_v41, 0.0  ;;  %v1274_v2 = vpop.f32.mrf.mxu3 }
 0x282   : > { %v1826_v56 = vpop.f32.mrf.mxu1  ;;  %v1275_v34 = vadd.f32 %v3544_v39, %v1274_v2 }
 0x283   : > { %v1460_v58 = vpack.c.bf16 %v1363_v55, %v1362_v12  ;;  %v1827_v59 = vadd.f32 %v3613_v29, %v1826_v56 }
 0x284   : > { %v1419_v13 = vmax.f32 %v1275_v34, 0.0 }
 0x285   : > { %2848 = vmatmul.msk.bf16.gmra.mxu1 %vm1514_vm2, %v1460_v58 }
 0x286   : > { %v1137_v3 = vpop.f32.mrf.mxu0  ;;  %v1488_v19 = vpack.c.bf16 %v1419_v13, %v1418_v22 }
 0x287   : > { %v1138_v11 = vadd.f32 %v3544_v39, %v1137_v3  ;;  %v3696_v15 = vpop.f32.mrf.mxu2 }
 0x289   : > { %v1364_v60 = vmax.f32 %v1138_v11, 0.0  ;;  %v1277_v61 = vpop.f32.mrf.mxu3  ;;  %v2080_v11 = vmax.f32 %v1827_v59, 0.0 }
 0x28a   : > { %v1828_v6 = vpop.f32.mrf.mxu1  ;;  %v1278_v57 = vadd.f32 %v3544_v39, %v1277_v61 }
 0x28b   : > { %2876 = vmatmul.msk.bf16.gmra.mxu2 %vm1514_vm2, %v1488_v19  ;;  %v1829_v12 = vadd.f32 %v3613_v29, %v1828_v6  ;;  %v1822_v19 = vadd.f32 %v3613_v29, %v3663_v27 }
 0x28c   : > { %v1420_v20 = vmax.f32 %v1278_v57, 0.0 }
 0x28d   : > { %v2081_v22 = vmax.f32 %v1829_v12, 0.0  ;;  %v2078_v31 = vmax.f32 %v1822_v19, 0.0 }
 0x28e   : > { %v1139_v18 = vpop.f32.mrf.mxu0 }
 0x28f   : > { %v1140_v16 = vadd.f32 %v3544_v39, %v1139_v18  ;;  %v3705_v35 = vpop.f32.mrf.mxu2  ;;  %v1824_v18 = vadd.f32 %v3613_v29, %v3676_v43 }
 0x291   : > { %v1365_v25 = vmax.f32 %v1140_v16, 0.0  ;;  %v1279_v44 = vpop.f32.mrf.mxu3  ;;  %v2188_v16 = vpack.c.bf16 %v2081_v22, %v2080_v11 }
 0x292   : > { %v1831_v26 = vpop.f32.mrf.mxu1  ;;  %v1280_v47 = vadd.f32 %v3544_v39, %v1279_v44 }
 0x293   : > { %v1461_v62 = vpack.c.bf16 %v1365_v25, %v1364_v60  ;;  %v1832_v40 = vadd.f32 %v3613_v29, %v1831_v26  ;;  %v2079_v25 = vmax.f32 %v1824_v18, 0.0 }
 0x294   : > { %v1421_v46 = vmax.f32 %v1280_v47, 0.0  ;;  %v1957_v47 = vadd.f32 %v3613_v29, %v3670_v17 }
 0x295   : > { %2849 = vmatmul.msk.bf16.gmra.mxu1 %vm1514_vm2, %v1461_v62  ;;  %v2082_v48 = vmax.f32 %v1832_v40, 0.0  ;;  %v2187_v44 = vpack.c.bf16 %v2079_v25, %v2078_v31  ;;  %v1964_v25 = vadd.f32 %v3613_v29, %v3696_v15 }
 0x296   : > { %v1142_v10 = vpop.f32.mrf.mxu0  ;;  %v1489_v58 = vpack.c.bf16 %v1421_v46, %v1420_v20 }
 0x297   : > { %v1143_v37 = vadd.f32 %v3544_v39, %v1142_v10  ;;  %v3714_v52 = vpop.f32.mrf.mxu2 }
 0x299   : > { %v1366_v63 = vmax.f32 %v1143_v37, 0.0  ;;  %v1282_v2 = vpop.f32.mrf.mxu3 }
 0x29a   : > { %v1833_v30 = vpop.f32.mrf.mxu1  ;;  %v1283_v56 = vadd.f32 %v3544_v39, %v1282_v2 }
 0x29b   : > { %v1834_v45 = vadd.f32 %v3613_v29, %v1833_v30  ;;  %2877 = vmatmul.msk.bf16.gmra.mxu2 %vm1514_vm2, %v1489_v58 }
 0x29c   : > { %v1422_v61 = vmax.f32 %v1283_v56, 0.0 }
 0x29d   : > { %v2083_v41 = vmax.f32 %v1834_v45, 0.0 }
 0x29e   : > { %v1144_v53 = vpop.f32.mrf.mxu0 }
 0x29f   : > { %v2189_v55 = vpack.c.bf16 %v2083_v41, %v2082_v48  ;;  %v1145_v54 = vadd.f32 %v3544_v39, %v1144_v53  ;;  %v3721_v13 = vpop.f32.mrf.mxu2  ;;  %v1959_v48 = vadd.f32 %v3613_v29, %v3680_v49 }
 0x2a1   : > { %v1367_v3 = vmax.f32 %v1145_v54, 0.0  ;;  %2276 = vmatpush.bf16.xpose.msra.mxu2 %v2189_v55  ;;  %v1284_v60 = vpop.f32.mrf.mxu3  ;;  %v2132_v55 = vmax.f32 %v1957_v47, 0.0  ;;  %v2133_v54 = vmax.f32 %v1959_v48, 0.0 }
 0x2a2   : > { %v1836_v5 = vpop.f32.mrf.mxu1  ;;  %v1285_v62 = vadd.f32 %v3544_v39, %v1284_v60 }
 0x2a3   : > { %v1462_v34 = vpack.c.bf16 %v1367_v3, %v1366_v63  ;;  %v1837_v21 = vadd.f32 %v3613_v29, %v1836_v5  ;;  %v3746_v63 = vpack.c.bf16 %v2133_v54, %v2132_v55 }
 0x2a4   : > { %v1423_v57 = vmax.f32 %v1285_v62, 0.0 }
 0x2a5   : > { %2850 = vmatmul.msk.bf16.gmra.mxu1 %vm1514_vm2, %v1462_v34  ;;  %v2084_v32 = vmax.f32 %v1837_v21, 0.0 }
 0x2a6   : > { %v1147_v6 = vpop.f32.mrf.mxu0  ;;  %v1490_v45 = vpack.c.bf16 %v1423_v57, %v1422_v61 }
 0x2a7   : > { %v1148_v43 = vadd.f32 %v3544_v39, %v1147_v6  ;;  %v3732_v40 = vpop.f32.mrf.mxu2 }
 0x2a9   : > { %2277 = vmatpush.bf16.xpose.msra.mxu2 %v2188_v16  ;;  %v1368_v37 = vmax.f32 %v1148_v43, 0.0  ;;  %v1287_v53 = vpop.f32.mrf.mxu3 }
 0x2aa   : > { %v1838_v23 = vpop.f32.mrf.mxu1  ;;  %v1288_v17 = vadd.f32 %v3544_v39, %v1287_v53 }
 0x2ab   : > { %v1839_v26 = vadd.f32 %v3613_v29, %v1838_v23  ;;  %2878 = vmatmul.msk.bf16.gmra.mxu2 %vm1514_vm2, %v1490_v45 }
 0x2ac   : > { %v1424_v22 = vmax.f32 %v1288_v17, 0.0 }
 0x2ad   : > { %v2085_v10 = vmax.f32 %v1839_v26, 0.0 }
 0x2ae   : > { %v1149_v27 = vpop.f32.mrf.mxu0 }
 0x2af   : > { %v1150_v30 = vadd.f32 %v3544_v39, %v1149_v27  ;;  %v3735_v20 = vpack.c.bf16 %v2085_v10, %v2084_v32  ;;  %v3743_v58 = vpop.f32.mrf.mxu2  ;;  %v2135_v10 = vmax.f32 %v1964_v25, 0.0 }
 0x2b1   : > { %v1369_v41 = vmax.f32 %v1150_v30, 0.0  ;;  %2278 = vmatpush.bf16.xpose.msra.mxu2 %v2187_v44  ;;  %v1289_v5 = vpop.f32.mrf.mxu3 }
 0x2b2   : > { %v1841_v46 = vpop.f32.mrf.mxu1  ;;  %v1290_v34 = vadd.f32 %v3544_v39, %v1289_v5 }
 0x2b3   : > { %v1463_v12 = vpack.c.bf16 %v1369_v41, %v1368_v37  ;;  %v1842_v49 = vadd.f32 %v3613_v29, %v1841_v46 }
 0x2b4   : > { %v1425_v16 = vmax.f32 %v1290_v34, 0.0 }
 0x2b5   : > { %2851 = vmatmul.msk.bf16.gmra.mxu1 %vm1514_vm2, %v1463_v12  ;;  %v2086_v11 = vmax.f32 %v1842_v49, 0.0  ;;  %v1969_v49 = vadd.f32 %v3613_v29, %v3714_v52 }
 0x2b6   : > { %v1152_v59 = vpop.f32.mrf.mxu0  ;;  %v1491_v23 = vpack.c.bf16 %v1425_v16, %v1424_v22 }
 0x2b7   : > { %v1153_v6 = vadd.f32 %v3544_v39, %v1152_v59  ;;  %v3753_v56 = vpop.f32.mrf.mxu2 }
 0x2b9   : > { %2279 = vmatpush.bf16.xpose.msra.mxu2 %v3657_v9  ;;  %v1962_v9 = vadd.f32 %v3613_v29, %v3689_v1  ;;  %v1370_v26 = vmax.f32 %v1153_v6, 0.0  ;;  %v1292_v31 = vpop.f32.mrf.mxu3  ;;  %v2137_v6 = vmax.f32 %v1969_v49, 0.0 }
 0x2ba   : > { %v1843_v3 = vpop.f32.mrf.mxu1  ;;  %v1293_v1 = vadd.f32 %v3544_v39, %v1292_v31 }
 0x2bb   : > { %v1844_v2 = vadd.f32 %v3613_v29, %v1843_v3  ;;  %2879 = vmatmul.msk.bf16.gmra.mxu2 %vm1514_vm2, %v1491_v23  ;;  %v2134_v43 = vmax.f32 %v1962_v9, 0.0 }
 0x2bc   : > { %v1426_v47 = vmax.f32 %v1293_v1, 0.0 }
 0x2bd   : > { %v2087_v18 = vmax.f32 %v1844_v2, 0.0  ;;  %v3768_v30 = vpack.c.bf16 %v2135_v10, %v2134_v43 }
 0x2be   : > { %v1154_v19 = vpop.f32.mrf.mxu0 }
 0x2bf   : > { %v1155_v21 = vadd.f32 %v3544_v39, %v1154_v19  ;;  %v3756_v60 = vpack.c.bf16 %v2087_v18, %v2086_v11  ;;  %v3765_v57 = vpop.f32.mrf.mxu2 }
 0x2c1   : > { %v1371_v61 = vmax.f32 %v1155_v21, 0.0  ;;  %2280 = vmatpush.bf16.xpose.msra.mxu2 %v3637_v36  ;;  %v1294_v44 = vpop.f32.mrf.mxu3 }
 0x2c2   : > { %v1846_v62 = vpop.f32.mrf.mxu1  ;;  %v1295_v48 = vadd.f32 %v3544_v39, %v1294_v44 }
 0x2c3   : > { %v1464_v32 = vpack.c.bf16 %v1371_v61, %v1370_v26  ;;  %v1847_v15 = vadd.f32 %v3613_v29, %v1846_v62 }
 0x2c4   : > { %v1427_v53 = vmax.f32 %v1295_v48, 0.0 }
 0x2c5   : > { %2852 = vmatmul.msk.bf16.gmra.mxu1 %vm1514_vm2, %v1464_v32  ;;  %v2088_v37 = vmax.f32 %v1847_v15, 0.0  ;;  %v1974_v15 = vadd.f32 %v3613_v29, %v3732_v40 }
 0x2c6   : > { %v1157_v27 = vpop.f32.mrf.mxu0  ;;  %v1492_v59 = vpack.c.bf16 %v1427_v53, %v1426_v47 }
 0x2c7   : > { %v1158_v41 = vadd.f32 %v3544_v39, %v1157_v27  ;;  %v3775_v12 = vpop.f32.mrf.mxu2 }
 0x2c9   : > { %2281 = vmatpush.bf16.xpose.msra.mxu2 %v3610_v7  ;;  %v1967_v7 = vadd.f32 %v3613_v29, %v3705_v35  ;;  %v1372_v3 = vmax.f32 %v1158_v41, 0.0  ;;  %v1297_v22 = vpop.f32.mrf.mxu3 }
 0x2ca   : > { %v1848_v36 = vpop.f32.mrf.mxu1  ;;  %v1298_v35 = vadd.f32 %v3544_v39, %v1297_v22 }
 0x2cb   : > { %v1849_v45 = vadd.f32 %v3613_v29, %v1848_v36  ;;  %2880 = vmatmul.msk.bf16.gmra.mxu2 %vm1514_vm2, %v1492_v59  ;;  %v2136_v11 = vmax.f32 %v1967_v7, 0.0 }
 0x2cc   : > { %v1428_v9 = vmax.f32 %v1298_v35, 0.0 }
 0x2cd   : > { %v2089_v46 = vmax.f32 %v1849_v45, 0.0  ;;  %v3790_v19 = vpack.c.bf16 %v2137_v6, %v2136_v11 }
 0x2ce   : > { %v1159_v55 = vpop.f32.mrf.mxu0 }
 0x2cf   : > { %v1160_v54 = vadd.f32 %v3544_v39, %v1159_v55  ;;  %v3778_v17 = vpack.c.bf16 %v2089_v46, %v2088_v37  ;;  %v3787_v18 = vpop.f32.mrf.mxu2  ;;  %v2139_v37 = vmax.f32 %v1974_v15, 0.0 }
 0x2d1   : > { %v1373_v5 = vmax.f32 %v1160_v54, 0.0  ;;  %2282 = vmatpush.bf16.xpose.msra.mxu2 %v3584_v38  ;;  %v1299_v21 = vpop.f32.mrf.mxu3 }
 0x2d2   : > { %v1851_v2 = vpop.f32.mrf.mxu1  ;;  %v1300_v25 = vadd.f32 %v3544_v39, %v1299_v21 }
 0x2d3   : > { %v1465_v34 = vpack.c.bf16 %v1373_v5, %v1372_v3  ;;  %v1852_v52 = vadd.f32 %v3613_v29, %v1851_v2 }
 0x2d4   : > { %v1429_v31 = vmax.f32 %v1300_v25, 0.0 }
 0x2d5   : > { %2853 = vmatmul.msk.bf16.gmra.mxu1 %vm1514_vm2, %v1465_v34  ;;  %v2090_v26 = vmax.f32 %v1852_v52, 0.0 }
 0x2d6   : > { %v1162_v16 = vpop.f32.mrf.mxu0  ;;  %v1493_v27 = vpack.c.bf16 %v1429_v31, %v1428_v9 }
 0x2d7   : > { %v1163_v61 = vadd.f32 %v3544_v39, %v1162_v16  ;;  %v3797_v32 = vpop.f32.mrf.mxu2 }
 0x2d9   : > { %2283 = vmatpush.bf16.xpose.msra.mxu2 %v3559_v0  ;;  %v1972_v0 = vadd.f32 %v3613_v29, %v3721_v13  ;;  %v1374_v36 = vmax.f32 %v1163_v61, 0.0 }
 0x2da   : > { %v1853_v38 = vpop.f32.mrf.mxu1 }
 0x2db   : > { %v1854_v23 = vadd.f32 %v3613_v29, %v1853_v38  ;;  %2881 = vmatmul.msk.bf16.gmra.mxu2 %vm1514_vm2, %v1493_v27  ;;  %v2138_v48 = vmax.f32 %v1972_v0, 0.0 }
 0x2dd   : > { %v2091_v62 = vmax.f32 %v1854_v23, 0.0  ;;  %v3810_v53 = vpack.c.bf16 %v2139_v37, %v2138_v48 }
 0x2de   : > { %v1164_v43 = vpop.f32.mrf.mxu0 }
 0x2df   : > { %v1165_v10 = vadd.f32 %v3544_v39, %v1164_v43  ;;  %v3800_v1 = vpack.c.bf16 %v2091_v62, %v2090_v26  ;;  %v3808_v41 = vpop.f32.mrf.mxu2 }
 0x2e1   : > { %v1375_v44 = vmax.f32 %v1165_v10, 0.0 }
 0x2e2   : > { %v1856_v45 = vpop.f32.mrf.mxu1 }
 0x2e3   : > { %v1466_v47 = vpack.c.bf16 %v1375_v44, %v1374_v36  ;;  %v1857_v13 = vadd.f32 %v3613_v29, %v1856_v45 }
 0x2e5   : > { %2854 = vmatmul.msk.bf16.gmra.mxu1 %vm1514_vm2, %v1466_v47  ;;  %v2092_v54 = vmax.f32 %v1857_v13, 0.0 }
 0x2e6   : > { %v1167_v46 = vpop.f32.mrf.mxu0 }
 0x2e7   : > { %v1168_v59 = vadd.f32 %v3544_v39, %v1167_v46  ;;  %v3815_v49 = vpop.f32.mrf.mxu2 }
 0x2e9   : > { %v1376_v22 = vmax.f32 %v1168_v59, 0.0 }
 0x2ea   : > { %v1858_v55 = vpop.f32.mrf.mxu1 }
 0x2eb   : > { %v1859_v40 = vadd.f32 %v3613_v29, %v1858_v55 }
 0x2ed   : > { %v2093_v7 = vmax.f32 %v1859_v40, 0.0 }
 0x2ee   : > { %v1169_v3 = vpop.f32.mrf.mxu0 }
 0x2ef   : > { %v3817_v5 = vpack.c.bf16 %v2093_v7, %v2092_v54  ;;  %v1170_v2 = vadd.f32 %v3544_v39, %v1169_v3  ;;  %v1996_v16 = vpop.f32.mrf.mxu2 }
 0x2f0   : > { %v1997_v38 = vadd.f32 %v3613_v29, %v1996_v16 }
 0x2f1   : > { %v1377_v34 = vmax.f32 %v1170_v2, 0.0 }
 0x2f2   : > { %v1861_v11 = vpop.f32.mrf.mxu1  ;;  %v2148_v26 = vmax.f32 %v1997_v38, 0.0 }
 0x2f3   : > { %v1467_v6 = vpack.c.bf16 %v1377_v34, %v1376_v22 }
 0x2f5   : > { %2855 = vmatmul.msk.bf16.gmra.mxu1 %vm1514_vm2, %v1467_v6 }
 0x2f6   : > { %v1172_v35 = vpop.f32.mrf.mxu0 }
 0x2f7   : > { %v1173_v21 = vadd.f32 %v3544_v39, %v1172_v35  ;;  %v1998_v23 = vpop.f32.mrf.mxu2 }
 0x2f8   : > { %v1999_v61 = vadd.f32 %v3613_v29, %v1998_v23 }
 0x2f9   : > { %v1378_v62 = vmax.f32 %v1173_v21, 0.0 }
 0x2fa   : > { %v1863_v52 = vpop.f32.mrf.mxu1  ;;  %v2149_v43 = vmax.f32 %v1999_v61, 0.0 }
 0x2fc   : > { %v3825_v0 = vpack.c.bf16 %v2149_v43, %v2148_v26  ;;  %v1864_v26 = vadd.f32 %v3613_v29, %v1863_v52 }
 0x2fe   : > { %v1174_v9 = vpop.f32.mrf.mxu0 }
 0x2ff   : > { %v1175_v25 = vadd.f32 %v3544_v39, %v1174_v9  ;;  %v2001_v15 = vpop.f32.mrf.mxu2 }
 0x300   : > { %v2002_v44 = vadd.f32 %v3613_v29, %v2001_v15 }
 0x301   : > { %v1379_v31 = vmax.f32 %v1175_v25, 0.0 }
 0x302   : > { %v1866_v10 = vpop.f32.mrf.mxu1  ;;  %v2150_v47 = vmax.f32 %v2002_v44, 0.0 }
 0x303   : > { %v1468_v27 = vpack.c.bf16 %v1379_v31, %v1378_v62  ;;  %v1867_v35 = vadd.f32 %v3613_v29, %v1866_v10  ;;  %v1862_v62 = vadd.f32 %v3613_v29, %v1861_v11 }
 0x305   : > { %2856 = vmatmul.msk.bf16.gmra.mxu1 %vm1514_vm2, %v1468_v27  ;;  %v2096_v9 = vmax.f32 %v1867_v35, 0.0  ;;  %v2095_v27 = vmax.f32 %v1864_v26, 0.0 }
 0x307   : > { %v2003_v45 = vpop.f32.mrf.mxu2 }
 0x308   : > { %v2004_v39 = vadd.f32 %v3613_v29, %v2003_v45 }
 0x30a   : > { %v1868_v36 = vpop.f32.mrf.mxu1  ;;  %v2151_v48 = vmax.f32 %v2004_v39, 0.0 }
 0x30b   : > { %v1869_v22 = vadd.f32 %v3613_v29, %v1868_v36  ;;  %v2094_v36 = vmax.f32 %v1862_v62, 0.0 }
 0x30c   : > { %v3830_v46 = vpack.c.bf16 %v2151_v48, %v2150_v47 }
 0x30d   : > { %v2097_v21 = vmax.f32 %v1869_v22, 0.0  ;;  %v2195_v39 = vpack.c.bf16 %v2095_v27, %v2094_v36 }
 0x30f   : > { %v2006_v13 = vpop.f32.mrf.mxu2  ;;  %v2196_v61 = vpack.c.bf16 %v2097_v21, %v2096_v9 }
 0x310   : > { %v2007_v59 = vadd.f32 %v3613_v29, %v2006_v13 }
 0x312   : > { %v1871_v37 = vpop.f32.mrf.mxu1  ;;  %v2152_v6 = vmax.f32 %v2007_v59, 0.0 }
 0x313   : > { %v1872_v55 = vadd.f32 %v3613_v29, %v1871_v37 }
 0x315   : > { %2857 = vmatmul.msk.bf16.gmra.mxu1 %vm1514_vm2, %v3349_v33  ;;  %v2098_v7 = vmax.f32 %v1872_v55, 0.0 }
 0x317   : > { %v2008_v2 = vpop.f32.mrf.mxu2 }
 0x318   : > { %v2009_v16 = vadd.f32 %v3613_v29, %v2008_v2 }
 0x31a   : > { %v1873_v40 = vpop.f32.mrf.mxu1  ;;  %v2153_v33 = vmax.f32 %v2009_v16, 0.0 }
 0x31b   : > { %v1874_v54 = vadd.f32 %v3613_v29, %v1873_v40 }
 0x31c   : > { %v3840_v23 = vpack.c.bf16 %v2153_v33, %v2152_v6 }
 0x31d   : > { %v2099_v3 = vmax.f32 %v1874_v54, 0.0  ;;  %v3855_v54 = vld [vmem:[%s4007_s5] sm:$0xff] }
 0x31e   : > { %2270 = vmatmul.bf16.vlgmr.msrb.gmra.mxu3 %v3855_v54  ;;  %2256 = vmatmul.bf16.vlgmr.msrb.gmra.mxu2 %v3855_v54 }
 0x31f   : > { %v2197_v34 = vpack.c.bf16 %v2099_v3, %v2098_v7  ;;  %v2011_v25 = vpop.f32.mrf.mxu2 }
 0x320   : > { %v2012_v15 = vadd.f32 %v3613_v29, %v2011_v25 }
 0x321   : > { %2290 = vmatpush.bf16.xpose.msra.mxu3 %v2197_v34 }
 0x322   : > { %v1876_v38 = vpop.f32.mrf.mxu1  ;;  %v2154_v52 = vmax.f32 %v2012_v15, 0.0 }
 0x323   : > { %v1877_v31 = vadd.f32 %v3613_v29, %v1876_v38 }
 0x325   : > { %v2100_v44 = vmax.f32 %v1877_v31, 0.0 }
 0x327   : > { %v2013_v47 = vpop.f32.mrf.mxu2 }
 0x328   : > { %v2014_v37 = vadd.f32 %v3613_v29, %v2013_v47 }
 0x329   : > { %2291 = vmatpush.bf16.xpose.msra.mxu3 %v2196_v61 }
 0x32a   : > { %v1878_v43 = vpop.f32.mrf.mxu1  ;;  %v2155_v11 = vmax.f32 %v2014_v37, 0.0 }
 0x32b   : > { %v1879_v10 = vadd.f32 %v3613_v29, %v1878_v43 }
 0x32c   : > { %v3850_v55 = vpack.c.bf16 %v2155_v11, %v2154_v52 }
 0x32d   : > { %v2101_v45 = vmax.f32 %v1879_v10, 0.0 }
 0x32e   : > { %2284 = vmatmul.bf16.vlgmr.msra.gmra.mxu2 %v3855_v54 }
 0x32f   : > { %v3847_v48 = vpack.c.bf16 %v2101_v45, %v2100_v44  ;;  %v2016_v40 = vpop.f32.mrf.mxu2 }
 0x330   : > { %v2017_v2 = vadd.f32 %v3613_v29, %v2016_v40 }
 0x331   : > { %2292 = vmatpush.bf16.xpose.msra.mxu3 %v2195_v39 }
 0x332   : > { %v1881_v13 = vpop.f32.mrf.mxu1  ;;  %v2156_v35 = vmax.f32 %v2017_v2, 0.0  ;;  %v3107_v2 = vmov 0  }
 0x333   : > { %v1882_v59 = vadd.f32 %v3613_v29, %v1881_v13  ;;  %3021 = vset.pattern.permute.xlu0 %v3107_v2 }
 0x335   : > { %v2102_v22 = vmax.f32 %v1882_v59, 0.0 }
 0x337   : > { %v2018_v6 = vpop.f32.mrf.mxu2 }
 0x338   : > { %v2019_v33 = vadd.f32 %v3613_v29, %v2018_v6 }
 0x339   : > { %2293 = vmatpush.bf16.xpose.msra.mxu3 %v3817_v5 }
 0x33a   : > { %v1883_v7 = vpop.f32.mrf.mxu1  ;;  %v2157_v5 = vmax.f32 %v2019_v33, 0.0 }
 0x33b   : > { %v1884_v3 = vadd.f32 %v3613_v29, %v1883_v7 }
 0x33c   : > { %v3867_v21 = vpack.c.bf16 %v2157_v5, %v2156_v35  ;;  %v2231_v5 = vld [vmem:[%s4008_s6 + $0x8] sm:$0xff] }
 0x33d   : > { %v2103_v34 = vmax.f32 %v1884_v3, 0.0 }
 0x33f   : > { %v3863_v16 = vpack.c.bf16 %v2103_v34, %v2102_v22  ;;  %v2021_v43 = vpop.f32.mrf.mxu2  ;;  %v2230_v34 = vld [vmem:[%s4008_s6] sm:$0xff] }
 0x340   : > { %2234 = vperm.xlu0 %3021, %v2230_v34  }
 0x341   : > { %2294 = vmatpush.bf16.xpose.msra.mxu3 %v3800_v1 }
 0x342   : > { %v1886_v38 = vpop.f32.mrf.mxu1 }
 0x343   : > { %v1887_v9 = vadd.f32 %v3613_v29, %v1886_v38 }
 0x345   : > { %v2104_v61 = vmax.f32 %v1887_v9, 0.0 }
 0x347   : > { %v2023_v15 = vpop.f32.mrf.mxu2 }
 0x348   : > { %2239 = vperm.xlu0 %3021, %v2231_v5  }
 0x349   : > { %2295 = vmatpush.bf16.xpose.msra.mxu3 %v3778_v17 }
 0x34a   : > { %v1888_v25 = vpop.f32.mrf.mxu1 }
 0x34b   : > { %v1889_v26 = vadd.f32 %v3613_v29, %v1888_v25 }
 0x34d   : > { %v2105_v62 = vmax.f32 %v1889_v26, 0.0  ;;  %v2024_v26 = vadd.f32 %v3613_v29, %v2023_v15 }
 0x34f   : > { %v3873_v31 = vpack.c.bf16 %v2105_v62, %v2104_v61 }
 0x351   : > { %2296 = vmatpush.bf16.xpose.msra.mxu3 %v3756_v60  ;;  %v2026_v60 = vpop.f32.mrf.mxu2 }
 0x352   : > { %v1891_v1 = vpop.f32.mrf.mxu1  ;;  %v2027_v35 = vadd.f32 %v3613_v29, %v2026_v60 }
 0x353   : > { %v1892_v27 = vadd.f32 %v3613_v29, %v1891_v1 }
 0x354   : > { %v2160_v9 = vmax.f32 %v2027_v35, 0.0 }
 0x355   : > { %v2106_v36 = vmax.f32 %v1892_v27, 0.0 }
 0x359   : > { %2297 = vmatpush.bf16.xpose.msra.mxu3 %v3735_v20  ;;  %v2028_v13 = vpop.f32.mrf.mxu2 }
 0x35a   : > { %v1893_v10 = vpop.f32.mrf.mxu1 }
 0x35b   : > { %v1894_v17 = vadd.f32 %v3613_v29, %v1893_v10  ;;  %v2159_v10 = vmax.f32 %v2024_v26, 0.0 }
 0x35d   : > { %v2107_v44 = vmax.f32 %v1894_v17, 0.0 }
 0x35f   : > { %v3880_v45 = vpack.c.bf16 %v2107_v44, %v2106_v36 }
 0x360   : > { %2298 = vmatmul.bf16.vlgmr.msra.gmra.mxu3 %v3855_v54 }
 0x361   : > { %2318 = vmatpush.bf16.xpose.msrb.mxu3 %v3665_v28  ;;  %v2031_v7 = vpop.f32.mrf.mxu2 }
 0x362   : > { %v1896_v47 = vpop.f32.mrf.mxu1 }
 0x363   : > { %v1897_v39 = vadd.f32 %v3613_v29, %v1896_v47 }
 0x365   : > { %v2108_v20 = vmax.f32 %v1897_v39, 0.0 }
 0x369   : > { %2319 = vmatpush.bf16.xpose.msrb.mxu3 %v3708_v24  ;;  %v2033_v3 = vpop.f32.mrf.mxu2 }
 0x36a   : > { %v1898_v52 = vpop.f32.mrf.mxu1  ;;  %v2034_v22 = vadd.f32 %v3613_v29, %v2033_v3 }
 0x36b   : > { %v1899_v28 = vadd.f32 %v3613_v29, %v1898_v52 }
 0x36d   : > { %v2109_v37 = vmax.f32 %v1899_v28, 0.0 }
 0x36f   : > { %v2202_v11 = vpack.c.bf16 %v2109_v37, %v2108_v20 }
 0x371   : > { %2320 = vmatpush.bf16.xpose.msrb.mxu3 %v3692_v50  ;;  %v2032_v50 = vadd.f32 %v3613_v29, %v2031_v7 }
 0x372   : > { %v1901_v40 = vpop.f32.mrf.mxu1 }
 0x373   : > { %v1902_v20 = vadd.f32 %v3613_v29, %v1901_v40  ;;  %v1992_v40 = vadd.f32 %v3613_v29, %v3808_v41 }
 0x379   : > { %2321 = vmatpush.bf16.xpose.msrb.mxu3 %v3673_v42  ;;  %v2163_v42 = vmax.f32 %v2034_v22, 0.0 }
 0x37a   : > { %v1903_v59 = vpop.f32.mrf.mxu1 }
 0x37b   : > { %v1904_v52 = vadd.f32 %v3613_v29, %v1903_v59  ;;  %v3026_v59 = vld [vmem:[%s3213_s21] ss:$0 sm:$0xff]  ;;  %s3941_s21 = scalar_lea.vmem [#allocation2], %s2487_s15  ;;  %s3047_s15 = scalar_lea.hbm %s4009_s7, 256 }
 0x37c   : > { %s2391_s20 = sshll.u32 %s3941_s21, 4  ;;  %p3049_p2 = scmp.lt.s32.totalorder %s3047_s15, %s3043_s27  ;;  %s2392_s20 = int_to_ptr.vmem [resolvable:$true] %s2391_s20 }
 0x37d   : > { %v2111_v37 = vmax.f32 %v1904_v52, 0.0 }
 0x37e   : > { %p3050_p3 = por %p3049_p2, %p3048_p1 }
 0x380   : > { %p3051_p5 = pnand %p3050_p3, %p3046_p0 }
 0x381   : > { %2322 = vmatpush.bf16.xpose.msrb.mxu3 %v3647_v14  ;;  %v2162_v14 = vmax.f32 %v2032_v50, 0.0 }
 0x382   : > { %v1906_v24 = vpop.f32.mrf.mxu1 }
 0x383   : > { %v2229_v33 = vpack.c.bf16 %v2163_v42, %v2162_v14 }
 0x389   : > { %2323 = vmatpush.bf16.xpose.msrb.mxu3 %v3626_v8  ;;  %v2029_v8 = vadd.f32 %v3613_v29, %v2028_v13  ;;  %v2110_v13 = vmax.f32 %v1902_v20, 0.0 }
 0x38a   : > { %v1908_v6 = vpop.f32.mrf.mxu1 }
 0x38b   : > { %v2161_v25 = vmax.f32 %v2029_v8, 0.0  ;;  %v1909_v47 = vadd.f32 %v3613_v29, %v1908_v6  ;;  %v2203_v7 = vpack.c.bf16 %v2111_v37, %v2110_v13 }
 0x38d   : > { %v2228_v61 = vpack.c.bf16 %v2161_v25, %v2160_v9  ;;  %v2113_v15 = vmax.f32 %v1909_v47, 0.0 }
 0x391   : > { %2324 = vmatpush.bf16.xpose.msrb.mxu3 %v3597_v51  ;;  %v2022_v51 = vadd.f32 %v3613_v29, %v2021_v43  ;;  %v1907_v43 = vadd.f32 %v3613_v29, %v1906_v24  ;;  %v1979_v24 = vadd.f32 %v3026_v59, %v3753_v56 }
 0x392   : > { %v1911_v38 = vpop.f32.mrf.mxu1 }
 0x393   : > { %v1912_v62 = vadd.f32 %v3613_v29, %v1911_v38  ;;  %v2158_v27 = vmax.f32 %v2022_v51, 0.0  ;;  %v2112_v39 = vmax.f32 %v1907_v43, 0.0 }
 0x395   : > { %v2227_v44 = vpack.c.bf16 %v2159_v10, %v2158_v27  ;;  %v2204_v28 = vpack.c.bf16 %v2113_v15, %v2112_v39 }
 0x399   : > { %2325 = vmatpush.bf16.xpose.msrb.mxu3 %v3571_v4  ;;  %v2114_v4 = vmax.f32 %v1912_v62, 0.0 }
 0x39a   : > { %v1913_v1 = vpop.f32.mrf.mxu1 }
 0x39b   : > { %v1914_v17 = vadd.f32 %v3613_v29, %v1913_v1 }
 0x39d   : > { %v2115_v36 = vmax.f32 %v1914_v17, 0.0 }
 0x39f   : > { %v2205_v60 = vpack.c.bf16 %v2115_v36, %v2114_v4 }
 0x3a0   : > { %2326 = vmatmul.bf16.vlgmr.msrb.gmra.mxu3 %v3855_v54 }
 0x3a1   : > { %2346 = vmatpush.bf16.xpose.msra.mxu3 %v2229_v33  ;;  %2304 = vmatpush.bf16.xpose.msrb.mxu2 %v2205_v60 }
 0x3a9   : > { %2347 = vmatpush.bf16.xpose.msra.mxu3 %v2228_v61  ;;  %2305 = vmatpush.bf16.xpose.msrb.mxu2 %v2204_v28 }
 0x3b1   : > { %2348 = vmatpush.bf16.xpose.msra.mxu3 %v2227_v44  ;;  %2306 = vmatpush.bf16.xpose.msrb.mxu2 %v2203_v7 }
 0x3b2   : > { %v2235_v22 = vpop.permute.xlu0 %2234 }
 0x3b9   : > { %2349 = vmatpush.bf16.xpose.msra.mxu3 %v3867_v21  ;;  %2307 = vmatpush.bf16.xpose.msrb.mxu2 %v2202_v11  ;;  %v1994_v21 = vadd.f32 %v3613_v29, %v3815_v49  ;;  %v1982_v49 = vadd.f32 %v3613_v29, %v3765_v57  ;;  %v2141_v57 = vmax.f32 %v1979_v24, 0.0 }
 0x3ba   : > { %v2240_v14 = vpop.permute.xlu0 %2239 }
 0x3c1   : > { %2350 = vmatpush.bf16.xpose.msra.mxu3 %v3850_v55  ;;  %2308 = vmatpush.bf16.xpose.msrb.mxu2 %v3880_v45  ;;  %v2146_v55 = vmax.f32 %v1992_v40, 0.0 }
 0x3c9   : > { %2351 = vmatpush.bf16.xpose.msra.mxu3 %v3840_v23  ;;  %2309 = vmatpush.bf16.xpose.msrb.mxu2 %v3873_v31  ;;  %v2147_v23 = vmax.f32 %v1994_v21, 0.0  ;;  %v1989_v31 = vadd.f32 %v3613_v29, %v3797_v32 }
 0x3cb   : > { %v2145_v45 = vmax.f32 %v1989_v31, 0.0 }
 0x3d1   : > { %2352 = vmatpush.bf16.xpose.msra.mxu3 %v3830_v46  ;;  %2310 = vmatpush.bf16.xpose.msrb.mxu2 %v3863_v16  ;;  %v1987_v46 = vadd.f32 %v3613_v29, %v3787_v18  ;;  %v1984_v16 = vadd.f32 %v3613_v29, %v3775_v12  ;;  %v2142_v18 = vmax.f32 %v1982_v49, 0.0  ;;  %v2257_v29 = vpop.f32.mrf.mxu2  ;;  %v2271_v12 = vpop.f32.mrf.mxu3 }
 0x3d2   : > { %v2258_v34 = vadd.f32 %v2257_v29, %v2235_v22  ;;  %v2272_v6 = vadd.f32 %v2271_v12, %v2235_v22 }
 0x3d3   : > { %v2144_v41 = vmax.f32 %v1987_v46, 0.0  ;;  %v2143_v32 = vmax.f32 %v1984_v16, 0.0 }
 0x3d4   : > { %2360 = vst [vmem:[%s3941_s21] sm:$0xff] %v2258_v34 }
 0x3d5   : > { %v2220_v11 = vpack.c.bf16 %v2145_v45, %v2144_v41  ;;  %v2219_v3 = vpack.c.bf16 %v2143_v32, %v2142_v18  ;;  %2361 = vst [vmem:[%s3941_s21 + $0x8] sm:$0xff] %v2272_v6 }
 0x3d9   : > { %2353 = vmatpush.bf16.xpose.msra.mxu3 %v3825_v0  ;;  %v2221_v0 = vpack.c.bf16 %v2147_v23, %v2146_v55  ;;  %2311 = vmatpush.bf16.xpose.msrb.mxu2 %v3847_v48  ;;  %v1977_v48 = vadd.f32 %v3026_v59, %v3743_v58  ;;  %v2259_v58 = vpop.f32.mrf.mxu2  ;;  %v2273_v56 = vpop.f32.mrf.mxu3 }
 0x3da   : > { %v2260_v42 = vadd.f32 %v2259_v58, %v2240_v14 }
 0x3db   : > { %v2140_v2 = vmax.f32 %v1977_v48, 0.0 }
 0x3dc   : > { %2368 = vst [vmem:[%s3941_s21 + $0x40] sm:$0xff] %v2260_v42 }
 0x3dd   : > { %v2218_v50 = vpack.c.bf16 %v2141_v57, %v2140_v2 }
 0x3e0   : > { %2354 = vmatmul.bf16.vlgmr.msra.gmra.mxu3 %v3855_v54  ;;  %2312 = vmatmul.bf16.vlgmr.msrb.gmra.mxu2 %v3855_v54 }
 0x3e1   : > { %2332 = vmatpush.bf16.xpose.msra.mxu2 %v2221_v0  ;;  %v2285_v35 = vpop.f32.mrf.mxu2 }
 0x3e2   : > { %v2286_v33 = vadd.f32 %v2285_v35, %v2235_v22 }
 0x3e3   : > { %v2299_v8 = vpop.f32.mrf.mxu3 }
 0x3e4   : > { %v2300_v5 = vadd.f32 %v2299_v8, %v2235_v22  ;;  %2362 = vst [vmem:[%s3941_s21 + $0x10] sm:$0xff] %v2286_v33 }
 0x3e6   : > { %2363 = vst [vmem:[%s3941_s21 + $0x18] sm:$0xff] %v2300_v5 }
 0x3e9   : > { %2333 = vmatpush.bf16.xpose.msra.mxu2 %v2220_v11  ;;  %v2287_v38 = vpop.f32.mrf.mxu2 }
 0x3ea   : > { %v2288_v9 = vadd.f32 %v2287_v38, %v2240_v14 }
 0x3ec   : > { %2370 = vst [vmem:[%s3941_s21 + $0x50] sm:$0xff] %v2288_v9 }
 0x3f1   : > { %2334 = vmatpush.bf16.xpose.msra.mxu2 %v2219_v3 }
 0x3f9   : > { %2335 = vmatpush.bf16.xpose.msra.mxu2 %v2218_v50 }
 0x401   : > { %2336 = vmatpush.bf16.xpose.msra.mxu2 %v3810_v53  ;;  %v2274_v53 = vadd.f32 %v2273_v56, %v2240_v14 }
 0x403   : > { %2369 = vst [vmem:[%s3941_s21 + $0x48] sm:$0xff] %v2274_v53 }
 0x409   : > { %2337 = vmatpush.bf16.xpose.msra.mxu2 %v3790_v19  ;;  %v2301_v19 = vpop.f32.mrf.mxu3 }
 0x40a   : > { %v2302_v25 = vadd.f32 %v2301_v19, %v2240_v14 }
 0x40c   : > { %2371 = vst [vmem:[%s3941_s21 + $0x58] sm:$0xff] %v2302_v25 }
 0x411   : > { %2338 = vmatpush.bf16.xpose.msra.mxu2 %v3768_v30 }
 0x419   : > { %2339 = vmatpush.bf16.xpose.msra.mxu2 %v3746_v63 }
 0x420   : > { %2340 = vmatmul.bf16.vlgmr.msra.gmra.mxu2 %v3855_v54 }
 0x423   : > { %v2327_v51 = vpop.f32.mrf.mxu3 }
 0x424   : > { %v2328_v30 = vadd.f32 %v2327_v51, %v2235_v22 }
 0x426   : > { %2365 = vst [vmem:[%s3941_s21 + $0x28] sm:$0xff] %v2328_v30 }
 0x42b   : > { %v2329_v26 = vpop.f32.mrf.mxu3 }
 0x42c   : > { %v2330_v61 = vadd.f32 %v2329_v26, %v2240_v14 }
 0x42e   : > { %2373 = vst [vmem:[%s3941_s21 + $0x68] sm:$0xff] %v2330_v61 }
 0x463   : > { %v2355_v62 = vpop.f32.mrf.mxu3  ;;  %v2313_v63 = vpop.f32.mrf.mxu2 }
 0x464   : > { %v2356_v1 = vadd.f32 %v2355_v62, %v2235_v22  ;;  %v2314_v27 = vadd.f32 %v2313_v63, %v2235_v22 }
 0x466   : > { %2367 = vst [vmem:[%s3941_s21 + $0x38] sm:$0xff] %v2356_v1 }
 0x467   : > { %2364 = vst [vmem:[%s3941_s21 + $0x20] sm:$0xff] %v2314_v27 }
 0x46b   : > { %v2315_v10 = vpop.f32.mrf.mxu2  ;;  %v2357_v54 = vpop.f32.mrf.mxu3 }
 0x46c   : > { %v2316_v17 = vadd.f32 %v2315_v10, %v2240_v14  ;;  %v2358_v4 = vadd.f32 %v2357_v54, %v2240_v14 }
 0x46e   : > { %2372 = vst [vmem:[%s3941_s21 + $0x60] sm:$0xff] %v2316_v17 }
 0x46f   : > { %2375 = vst [vmem:[%s3941_s21 + $0x78] sm:$0xff] %v2358_v4 }
 0x4a3   : > { %v2341_v36 = vpop.f32.mrf.mxu2 }
 0x4a4   : > { %v2342_v44 = vadd.f32 %v2341_v36, %v2235_v22 }
 0x4a6   : > { %2366 = vst [vmem:[%s3941_s21 + $0x30] sm:$0xff] %v2342_v44 }
 0x4ab   : > { %v2343_v47 = vpop.f32.mrf.mxu2 }
 0x4ac   : > { %v2344_v60 = vadd.f32 %v2343_v47, %v2240_v14 }
 0x4ae   : > { %2374 = vst [vmem:[%s3941_s21 + $0x70] sm:$0xff] %v2344_v60 }
 0x4af   : > { %3054 = shalt.err (!%p3051_p5)
}
 0x4b0   : > { %s3108_s12 = smov 1024   ;;  %s3109_s21 = smov 64  }
 0x4b1   : > { %2963 = dma.vmem_to_hbm [thread:$0]  (%p3190_p4), %s2392_s20, 2048, %s2394_s22, %s2377_s23, %s3108_s12, %s3108_s12, %s3109_s21  }
 0x4b2 PF: > { %p2969_p6 = scmp.ge.s32.totalorder %s3105_s29, 2  ;;  %s2408_s18 = sand.u32 1, %s3085_s24  }
 0x4b3   : > { %s2409_s19 = scalar_lea.sflag [#allocation3], %s2408_s18 }
 0x4b4   : > { %p2966_p7 = pnand %p2969_p6, %p3197_p8 }
 0x4b6   : > { %p2967_p9 = pneg %p2966_p7 }
 0x4b8   : > { %3080 = dma.done.wait (%p2967_p9), %s2409_s19, 2048  }
 0x4b9   : > { %3082 = vsyncadd (%p2967_p9), %s2409_s19, 4294965248  ;;  %s20_s29 = sadd.s32 1, %s3105_s29   ;;  %s4012_s24 = smov %s3089_s25 }
 0x4ba   : > { %p17_p10 = scmp.ge.s32.totalorder %s20_s29, 4   ;;  %s4013_s25 = smov %s3093_s26 }
 0x4bb   : > { %s4014_s26 = smov %s3203_s14  ;;  %s4015_s27 = smov %s3101_s28 }
 0x4bc   : > { %s4016_s28 = smov %s4018_s9  ;;  %19 = sbr.rel (!%p17_p10) target bundleno = 4 (0x4), region = 86 }
 0x4c1   :  { %2415 = vsyncpa [#allocation3], 1 }
 0x4c2   :  { %2417 = vsyncpa [#allocation3 + $0x1], 1 }

</bundles_post_ra>
